<compile_context>
chip_gen: v7x
topology: tpu7x:2x2x1
jax: 0.10.0
libtpu: 0.0.40
codegen_flags: <defaults>
</compile_context>

<pallas_src>
import functools

import jax
import jax.numpy as jnp
from jax.experimental import pallas as pl
from jax.experimental.pallas import tpu as pltpu


# ---------------------------------------------------------------------------
# Pallas kernel
# ---------------------------------------------------------------------------
def lstm_net_kernel(x_ref,                                   # (B*T, D) batch-major
                    wih0_ref, whh0_ref, b0_ref,              # (D,4H) (H,4H) (1,4H)
                    wih1_ref, whh1_ref, b1_ref,              # (H,4H) (H,4H) (1,4H)
                    wlin_ref, blin_ref,                      # (H,O)  (1,O)
                    wout_ref, bout_ref,                      # SMEM: (T,)  (1,)
                    out_ref,                                 # (B, O)
                    *, T, B, H):
    O = wlin_ref.shape[1]
    whh0 = whh0_ref[...]
    wih1 = wih1_ref[...]
    whh1 = whh1_ref[...]
    b1 = b1_ref[...]

    # Hoisted layer-0 input projection: one big-M (B*T, D) x (D, 4H) matmul.
    # b_ih + b_hh are pre-folded into b0.  Per-timestep slices below do not
    # depend on the recurrent state, so they stay off the serial chain.
    gi0 = (jnp.dot(x_ref[...], wih0_ref[...],
                   preferred_element_type=jnp.float32) + b0_ref[...])
    gi0 = gi0.reshape(B, T, 4 * H)          # layout-trivial leading-dim split

    def cell(gates, c):
        """LSTM cell update, PyTorch gate order i|f|g|o.

        One full-width sigmoid covers i, f and o in a single EUP pass; only g
        and the new cell state need a tanh -> 3 EUP pushes per step (was 5
        partial-lane pushes).  `c is None` encodes a zero initial cell state.
        """
        sig = jax.nn.sigmoid(gates)                  # (B,4H): s(i)|s(f)|s(g)|s(o)
        g = jnp.tanh(gates[:, 2 * H:3 * H])
        i = sig[:, 0:H]
        o = sig[:, 3 * H:4 * H]
        ig = i * g
        c_new = ig if c is None else sig[:, H:2 * H] * c + ig
        h_new = o * jnp.tanh(c_new)
        return h_new, c_new

    def layer1_gates(h0_in, h1_prev):
        g = jnp.dot(h0_in, wih1, preferred_element_type=jnp.float32) + b1
        if h1_prev is not None:                      # zero initial hidden state
            g = g + jnp.dot(h1_prev, whh1, preferred_element_type=jnp.float32)
        return g

    # ---- software-pipelined 2-layer recurrence (statically unrolled) -------
    # Iteration t emits layer-0 step t and layer-1 step t-1.  Layer-0 step t
    # needs h0[t-1]; layer-1 step t-1 needs h0[t-1] and h1[t-2]: both are ready
    # at iteration start, so the two chains co-issue in the same bundles.
    h0, c0 = cell(gi0[:, 0, :], None)                # layer-0 step 0 (h0=c0=0)
    h1 = c1 = None
    h1_hist = []
    for t in range(1, T):
        gates0 = gi0[:, t, :] + jnp.dot(h0, whh0,
                                        preferred_element_type=jnp.float32)
        gates1 = layer1_gates(h0, h1)                # layer-1 step t-1
        new_h0, new_c0 = cell(gates0, c0)
        h1, c1 = cell(gates1, c1)
        h1_hist.append(h1)
        h0, c0 = new_h0, new_c0
    # drain: layer-1 step T-1
    h1, c1 = cell(layer1_gates(h0, h1), c1)
    h1_hist.append(h1)

    # TODO(synk): nn.LSTM inter-layer dropout=0.5 is training-only; eval no-op.

    # ---- per-timestep Linear(H->O) + ReLU as one (T*B, H) x (H, O) matmul --
    # Hidden-state history lives in vregs; a single concatenate builds the
    # time-major activation slab (row index = t*B + b).
    h1_all = jnp.concatenate(h1_hist, axis=0)                       # (T*B, H)
    z_all = jnp.maximum(
        jnp.dot(h1_all, wlin_ref[...], preferred_element_type=jnp.float32)
        + blin_ref[...], 0.0)                                       # (T*B, O)

    # ---- Linear(seq_length -> 1) over time, per batch, + ReLU --------------
    # VPU weighted sum over T with w_out/b_out read as SMEM scalars (replaces
    # the O(B^2*T) zero-padded kron selection matmul).
    y = wout_ref[0] * z_all[0:B, :]
    for t in range(1, T):
        y = y + wout_ref[t] * z_all[t * B:(t + 1) * B, :]
    out_ref[...] = jnp.maximum(y + bout_ref[0], 0.0)


# ---------------------------------------------------------------------------
# Wrapper
# ---------------------------------------------------------------------------
def lstm_net_forward(x, params, *, seq_length, hid_size):
    """x: (B, seq_length, nx, nd) -> (B, nx, nd)  (matches LSTMNet.forward)."""
    B = x.shape[0]
    nx, nd = x.shape[-2], x.shape[-1]
    D = nx * nd
    T = seq_length
    H = hid_size
    G = 4 * H
    O = params["w_lin"].shape[1]

    # Free contiguous reshape only -- no wrapper-side time-major transpose
    # (that was an extra full-input HBM round trip).
    x2d = x.reshape(B * T, D).astype(jnp.float32)

    # PyTorch LSTM adds b_ih + b_hh inside the gates -> fold into one bias.
    b0 = params["b_ih0"] + params["b_hh0"]
    b1 = params["b_ih1"] + params["b_hh1"]

    vmem = pl.BlockSpec(memory_space=pltpu.MemorySpace.VMEM)
    smem = pl.BlockSpec(memory_space=pltpu.MemorySpace.SMEM)

    flops = (2 * B * T * D * G            # hoisted layer-0 input projection
             + 2 * (T - 1) * B * H * G    # layer-0 recurrent matmuls
             + 2 * T * B * H * G          # layer-1 per-step input projections
             + 2 * (T - 1) * B * H * G    # layer-1 recurrent matmuls
             + 2 * T * B * H * O          # Linear(H -> O) over all timesteps
             + 2 * T * B * O)             # time-contraction weighted sum
    transcendentals = 2 * T * B * (G + 2 * H)   # sigmoid(4H)+tanh(H)+tanh(H)/cell
    bytes_accessed = 4 * (B * T * D + D * G + 3 * H * G + 2 * G
                          + H * O + O + T + 1 + B * O)

    # NOTE: single invocation, no grid -- every operand is tens of KB, far under
    # the default scoped VMEM on all generations (incl. v7x's 64 MiB physical).
    # At real batch sizes: grid=(B//B_TILE,) over batch with
    # dimension_semantics=("parallel",) (required to use both v7x TensorCores),
    # bf16 weights on v6e/v7x, and tiles re-budgeted for v7x's smaller VMEM.
    out = pl.pallas_call(
        functools.partial(lstm_net_kernel, T=T, B=B, H=H),
        out_shape=jax.ShapeDtypeStruct((B, O), jnp.float32),
        in_specs=[vmem,                      # x
                  vmem, vmem, vmem,          # layer-0 weights / folded bias
                  vmem, vmem, vmem,          # layer-1 weights / folded bias
                  vmem, vmem,                # per-timestep Linear
                  smem, smem],               # w_out / b_out scalars
        out_specs=vmem,
        cost_estimate=pl.CostEstimate(flops=flops,
                                      transcendentals=transcendentals,
                                      bytes_accessed=bytes_accessed),
    )(
        x2d,
        params["w_ih0"], params["w_hh0"], b0,
        params["w_ih1"], params["w_hh1"], b1,
        params["w_lin"], params["b_lin"],
        params["w_out"].reshape(T), params["b_out"].reshape(1),
    )
    return out.reshape(B, nx, nd)


# ---------------------------------------------------------------------------
# Deterministic parameter init (mirrors LSTMNet.init_weight / nn defaults)
# ---------------------------------------------------------------------------
def init_params(key, input_size, hid_size, seq_length, output_size):
    H = hid_size
    ks = jax.random.split(key, 10)

    def xavier_normal(k, fan_in, fan_out, shape):
        std = jnp.sqrt(2.0 / (fan_in + fan_out))
        return std * jax.random.normal(k, shape, jnp.float32)

    def xavier_uniform(k, fan_in, fan_out, shape):
        a = jnp.sqrt(6.0 / (fan_in + fan_out))
        return jax.random.uniform(k, shape, jnp.float32, -a, a)

    def lstm_bias(k, shape):
        a = 1.0 / jnp.sqrt(H)
        return jax.random.uniform(k, shape, jnp.float32, -a, a)

    # nn.LSTM layer 0: weight_ih_l0 (4H, D), weight_hh_l0 (4H, H) — xavier_normal.
    w_ih0 = xavier_normal(ks[0], input_size, 4 * H, (4 * H, input_size)).T   # (D,4H)
    w_hh0 = xavier_normal(ks[1], H, 4 * H, (4 * H, H)).T                     # (H,4H)
    b_ih0 = lstm_bias(ks[2], (1, 4 * H))
    b_hh0 = lstm_bias(ks[3], (1, 4 * H))
    # nn.LSTM layer 1
    w_ih1 = xavier_normal(ks[4], H, 4 * H, (4 * H, H)).T                     # (H,4H)
    w_hh1 = xavier_normal(ks[5], H, 4 * H, (4 * H, H)).T                     # (H,4H)
    b_ih1 = lstm_bias(ks[6], (1, 4 * H))
    b_hh1 = lstm_bias(ks[7], (1, 4 * H))
    # linear: Linear(H, output_size) — xavier_uniform weight, zero bias.
    w_lin = xavier_uniform(ks[8], H, output_size, (output_size, H)).T        # (H,O)
    b_lin = jnp.zeros((1, output_size), jnp.float32)
    # out: Linear(seq_length, 1) — xavier_uniform weight, zero bias.
    w_out = xavier_uniform(ks[9], seq_length, 1, (1, seq_length))            # (1,T)
    b_out = jnp.zeros((1,), jnp.float32)

    return dict(w_ih0=w_ih0, w_hh0=w_hh0, b_ih0=b_ih0, b_hh0=b_hh0,
                w_ih1=w_ih1, w_hh1=w_hh1, b_ih1=b_ih1, b_hh1=b_hh1,
                w_lin=w_lin, b_lin=b_lin, w_out=w_out, b_out=b_out)


# ---------------------------------------------------------------------------
# Pure-JAX reference (mirrors LSTMNet.forward, eval mode)
# ---------------------------------------------------------------------------
def reference_forward(x, params, *, seq_length, hid_size):
    B = x.shape[0]
    nx, nd = x.shape[-2], x.shape[-1]
    H = hid_size
    T = seq_length
    xs = x.reshape(B, T, nx * nd).astype(jnp.float32)

    def cell(x_t, h, c, w_ih, w_hh, b_ih, b_hh):
        g = x_t @ w_ih + b_ih + h @ w_hh + b_hh
        i = jax.nn.sigmoid(g[:, 0:H])
        f = jax.nn.sigmoid(g[:, H:2 * H])
        gg = jnp.tanh(g[:, 2 * H:3 * H])
        o = jax.nn.sigmoid(g[:, 3 * H:4 * H])
        c = f * c + i * gg
        h = o * jnp.tanh(c)
        return h, c

    h0 = c0 = h1 = c1 = jnp.zeros((B, H), jnp.float32)
    z_list = []
    for t in range(T):
        h0, c0 = cell(xs[:, t, :], h0, c0, params["w_ih0"], params["w_hh0"],
                      params["b_ih0"], params["b_hh0"])
        h1, c1 = cell(h0, h1, c1, params["w_ih1"], params["w_hh1"],
                      params["b_ih1"], params["b_hh1"])
        z_list.append(jnp.maximum(h1 @ params["w_lin"] + params["b_lin"], 0.0))
    new_out = jnp.stack(z_list, axis=2)                       # (B, O, T)
    y = jnp.einsum("bot,t->bo", new_out, params["w_out"][0]) + params["b_out"][0]
    return jnp.maximum(y, 0.0).reshape(B, nx, nd)


# ---------------------------------------------------------------------------
if __name__ == "__main__":
    # Forward-consistent small shapes:
    #   x: (B, T, nx, nd) = (2, 8, 4, 4) -> input_size = nx*nd = 16
    #   hid_size = 32, hid_layers = 2, seq_length = 8, output_size = nx*nd = 16
    B, T, nx, nd = 2, 8, 4, 4
    H = 32
    input_size = nx * nd
    output_size = nx * nd      # required by LSTMNet's final view(-1, nx, nd)

    key = jax.random.PRNGKey(0)
    k_x, k_p = jax.random.split(key)
    x = jax.random.normal(k_x, (B, T, nx, nd), jnp.float32)
    params = init_params(k_p, input_size, H, T, output_size)

    y = lstm_net_forward(x, params, seq_length=T, hid_size=H)
    y = jax.block_until_ready(y)

    y_ref = reference_forward(x, params, seq_length=T, hid_size=H)
    assert y.shape == (B, nx, nd)
    assert jnp.allclose(y, y_ref, atol=1e-4, rtol=1e-4), "mismatch vs reference"

    print("KERNEL_OK")
</pallas_src>

<mosaic_0001>
module attributes {stable_mosaic.version = 11 : i64} {
  func.func @lstm_net_kernel(%arg0: memref<16x16xf32, #tpu.memory_space<vmem>>, %arg1: memref<16x128xf32, #tpu.memory_space<vmem>>, %arg2: memref<32x128xf32, #tpu.memory_space<vmem>>, %arg3: memref<1x128xf32, #tpu.memory_space<vmem>>, %arg4: memref<32x128xf32, #tpu.memory_space<vmem>>, %arg5: memref<32x128xf32, #tpu.memory_space<vmem>>, %arg6: memref<1x128xf32, #tpu.memory_space<vmem>>, %arg7: memref<32x16xf32, #tpu.memory_space<vmem>>, %arg8: memref<1x16xf32, #tpu.memory_space<vmem>>, %arg9: memref<8xf32, #tpu.memory_space<smem>>, %arg10: memref<1xf32, #tpu.memory_space<smem>>, %arg11: memref<2x16xf32, #tpu.memory_space<vmem>>) attributes {dimension_semantics = [], scalar_prefetch = 0 : i64, scratch_operands = 0 : i64, tpu.core_type = #tpu.core_type<tc>} {
    %c0 = arith.constant 0 : index
    %c0_0 = arith.constant 0 : index
    %0 = vector.load %arg2[%c0, %c0_0] : memref<32x128xf32, #tpu.memory_space<vmem>>, vector<32x128xf32>
    %c0_1 = arith.constant 0 : index
    %c0_2 = arith.constant 0 : index
    %1 = vector.load %arg4[%c0_1, %c0_2] : memref<32x128xf32, #tpu.memory_space<vmem>>, vector<32x128xf32>
    %c0_3 = arith.constant 0 : index
    %c0_4 = arith.constant 0 : index
    %2 = vector.load %arg5[%c0_3, %c0_4] : memref<32x128xf32, #tpu.memory_space<vmem>>, vector<32x128xf32>
    %c0_5 = arith.constant 0 : index
    %c0_6 = arith.constant 0 : index
    %3 = vector.load %arg6[%c0_5, %c0_6] : memref<1x128xf32, #tpu.memory_space<vmem>>, vector<1x128xf32>
    %c0_7 = arith.constant 0 : index
    %c0_8 = arith.constant 0 : index
    %4 = vector.load %arg0[%c0_7, %c0_8] : memref<16x16xf32, #tpu.memory_space<vmem>>, vector<16x16xf32>
    %c0_9 = arith.constant 0 : index
    %c0_10 = arith.constant 0 : index
    %5 = vector.load %arg1[%c0_9, %c0_10] : memref<16x128xf32, #tpu.memory_space<vmem>>, vector<16x128xf32>
    %cst = arith.constant dense<0.000000e+00> : vector<16x128xf32>
    %6 = tpu.matmul %4, %5, %cst {dimension_numbers = #tpu.dot_dimension_numbers<[1], [0], [0], [1], [0, 0, 1, 1], [], []>} : vector<16x16xf32>, vector<16x128xf32>, vector<16x128xf32> -> vector<16x128xf32>
    %c0_11 = arith.constant 0 : index
    %c0_12 = arith.constant 0 : index
    %7 = vector.load %arg3[%c0_11, %c0_12] : memref<1x128xf32, #tpu.memory_space<vmem>>, vector<1x128xf32>
    %8 = vector.broadcast %7 : vector<1x128xf32> to vector<16x128xf32>
    %9 = arith.addf %6, %8 : vector<16x128xf32>
    %10 = vector.shape_cast %9 : vector<16x128xf32> to vector<2x8x128xf32>
    %11 = vector.extract_strided_slice %10 {offsets = [0, 0, 0], sizes = [2, 1, 128], strides = [1, 1, 1]} : vector<2x8x128xf32> to vector<2x1x128xf32>
    %12 = vector.shape_cast %11 : vector<2x1x128xf32> to vector<2x128xf32>
    %13 = arith.negf %12 : vector<2x128xf32>
    %14 = math.exp %13 : vector<2x128xf32>
    %cst_13 = arith.constant 1.000000e+00 : f32
    %15 = vector.broadcast %cst_13 : f32 to vector<2x128xf32>
    %16 = arith.addf %15, %14 : vector<2x128xf32>
    %17 = arith.divf %15, %16 : vector<2x128xf32>
    %18 = vector.extract_strided_slice %12 {offsets = [0, 64], sizes = [2, 32], strides = [1, 1]} : vector<2x128xf32> to vector<2x32xf32>
    %19 = math.tanh %18 : vector<2x32xf32>
    %20 = vector.extract_strided_slice %17 {offsets = [0, 0], sizes = [2, 32], strides = [1, 1]} : vector<2x128xf32> to vector<2x32xf32>
    %21 = vector.extract_strided_slice %17 {offsets = [0, 96], sizes = [2, 32], strides = [1, 1]} : vector<2x128xf32> to vector<2x32xf32>
    %22 = arith.mulf %20, %19 : vector<2x32xf32>
    %23 = math.tanh %22 : vector<2x32xf32>
    %24 = arith.mulf %21, %23 : vector<2x32xf32>
    %25 = vector.extract_strided_slice %10 {offsets = [0, 1, 0], sizes = [2, 1, 128], strides = [1, 1, 1]} : vector<2x8x128xf32> to vector<2x1x128xf32>
    %26 = vector.shape_cast %25 : vector<2x1x128xf32> to vector<2x128xf32>
    %cst_14 = arith.constant dense<0.000000e+00> : vector<2x128xf32>
    %27 = tpu.matmul %24, %0, %cst_14 {dimension_numbers = #tpu.dot_dimension_numbers<[1], [0], [0], [1], [0, 0, 1, 1], [], []>} : vector<2x32xf32>, vector<32x128xf32>, vector<2x128xf32> -> vector<2x128xf32>
    %28 = arith.addf %26, %27 : vector<2x128xf32>
    %cst_15 = arith.constant dense<0.000000e+00> : vector<2x128xf32>
    %29 = tpu.matmul %24, %1, %cst_15 {dimension_numbers = #tpu.dot_dimension_numbers<[1], [0], [0], [1], [0, 0, 1, 1], [], []>} : vector<2x32xf32>, vector<32x128xf32>, vector<2x128xf32> -> vector<2x128xf32>
    %30 = vector.broadcast %3 : vector<1x128xf32> to vector<2x128xf32>
    %31 = arith.addf %29, %30 : vector<2x128xf32>
    %32 = arith.negf %28 : vector<2x128xf32>
    %33 = math.exp %32 : vector<2x128xf32>
    %cst_16 = arith.constant 1.000000e+00 : f32
    %34 = vector.broadcast %cst_16 : f32 to vector<2x128xf32>
    %35 = arith.addf %34, %33 : vector<2x128xf32>
    %36 = arith.divf %34, %35 : vector<2x128xf32>
    %37 = vector.extract_strided_slice %28 {offsets = [0, 64], sizes = [2, 32], strides = [1, 1]} : vector<2x128xf32> to vector<2x32xf32>
    %38 = math.tanh %37 : vector<2x32xf32>
    %39 = vector.extract_strided_slice %36 {offsets = [0, 0], sizes = [2, 32], strides = [1, 1]} : vector<2x128xf32> to vector<2x32xf32>
    %40 = vector.extract_strided_slice %36 {offsets = [0, 96], sizes = [2, 32], strides = [1, 1]} : vector<2x128xf32> to vector<2x32xf32>
    %41 = arith.mulf %39, %38 : vector<2x32xf32>
    %42 = vector.extract_strided_slice %36 {offsets = [0, 32], sizes = [2, 32], strides = [1, 1]} : vector<2x128xf32> to vector<2x32xf32>
    %43 = arith.mulf %42, %22 : vector<2x32xf32>
    %44 = arith.addf %43, %41 : vector<2x32xf32>
    %45 = math.tanh %44 : vector<2x32xf32>
    %46 = arith.mulf %40, %45 : vector<2x32xf32>
    %47 = arith.negf %31 : vector<2x128xf32>
    %48 = math.exp %47 : vector<2x128xf32>
    %cst_17 = arith.constant 1.000000e+00 : f32
    %49 = vector.broadcast %cst_17 : f32 to vector<2x128xf32>
    %50 = arith.addf %49, %48 : vector<2x128xf32>
    %51 = arith.divf %49, %50 : vector<2x128xf32>
    %52 = vector.extract_strided_slice %31 {offsets = [0, 64], sizes = [2, 32], strides = [1, 1]} : vector<2x128xf32> to vector<2x32xf32>
    %53 = math.tanh %52 : vector<2x32xf32>
    %54 = vector.extract_strided_slice %51 {offsets = [0, 0], sizes = [2, 32], strides = [1, 1]} : vector<2x128xf32> to vector<2x32xf32>
    %55 = vector.extract_strided_slice %51 {offsets = [0, 96], sizes = [2, 32], strides = [1, 1]} : vector<2x128xf32> to vector<2x32xf32>
    %56 = arith.mulf %54, %53 : vector<2x32xf32>
    %57 = math.tanh %56 : vector<2x32xf32>
    %58 = arith.mulf %55, %57 : vector<2x32xf32>
    %59 = vector.extract_strided_slice %10 {offsets = [0, 2, 0], sizes = [2, 1, 128], strides = [1, 1, 1]} : vector<2x8x128xf32> to vector<2x1x128xf32>
    %60 = vector.shape_cast %59 : vector<2x1x128xf32> to vector<2x128xf32>
    %cst_18 = arith.constant dense<0.000000e+00> : vector<2x128xf32>
    %61 = tpu.matmul %46, %0, %cst_18 {dimension_numbers = #tpu.dot_dimension_numbers<[1], [0], [0], [1], [0, 0, 1, 1], [], []>} : vector<2x32xf32>, vector<32x128xf32>, vector<2x128xf32> -> vector<2x128xf32>
    %62 = arith.addf %60, %61 : vector<2x128xf32>
    %cst_19 = arith.constant dense<0.000000e+00> : vector<2x128xf32>
    %63 = tpu.matmul %46, %1, %cst_19 {dimension_numbers = #tpu.dot_dimension_numbers<[1], [0], [0], [1], [0, 0, 1, 1], [], []>} : vector<2x32xf32>, vector<32x128xf32>, vector<2x128xf32> -> vector<2x128xf32>
    %64 = vector.broadcast %3 : vector<1x128xf32> to vector<2x128xf32>
    %65 = arith.addf %63, %64 : vector<2x128xf32>
    %cst_20 = arith.constant dense<0.000000e+00> : vector<2x128xf32>
    %66 = tpu.matmul %58, %2, %cst_20 {dimension_numbers = #tpu.dot_dimension_numbers<[1], [0], [0], [1], [0, 0, 1, 1], [], []>} : vector<2x32xf32>, vector<32x128xf32>, vector<2x128xf32> -> vector<2x128xf32>
    %67 = arith.addf %65, %66 : vector<2x128xf32>
    %68 = arith.negf %62 : vector<2x128xf32>
    %69 = math.exp %68 : vector<2x128xf32>
    %cst_21 = arith.constant 1.000000e+00 : f32
    %70 = vector.broadcast %cst_21 : f32 to vector<2x128xf32>
    %71 = arith.addf %70, %69 : vector<2x128xf32>
    %72 = arith.divf %70, %71 : vector<2x128xf32>
    %73 = vector.extract_strided_slice %62 {offsets = [0, 64], sizes = [2, 32], strides = [1, 1]} : vector<2x128xf32> to vector<2x32xf32>
    %74 = math.tanh %73 : vector<2x32xf32>
    %75 = vector.extract_strided_slice %72 {offsets = [0, 0], sizes = [2, 32], strides = [1, 1]} : vector<2x128xf32> to vector<2x32xf32>
    %76 = vector.extract_strided_slice %72 {offsets = [0, 96], sizes = [2, 32], strides = [1, 1]} : vector<2x128xf32> to vector<2x32xf32>
    %77 = arith.mulf %75, %74 : vector<2x32xf32>
    %78 = vector.extract_strided_slice %72 {offsets = [0, 32], sizes = [2, 32], strides = [1, 1]} : vector<2x128xf32> to vector<2x32xf32>
    %79 = arith.mulf %78, %44 : vector<2x32xf32>
    %80 = arith.addf %79, %77 : vector<2x32xf32>
    %81 = math.tanh %80 : vector<2x32xf32>
    %82 = arith.mulf %76, %81 : vector<2x32xf32>
    %83 = arith.negf %67 : vector<2x128xf32>
    %84 = math.exp %83 : vector<2x128xf32>
    %cst_22 = arith.constant 1.000000e+00 : f32
    %85 = vector.broadcast %cst_22 : f32 to vector<2x128xf32>
    %86 = arith.addf %85, %84 : vector<2x128xf32>
    %87 = arith.divf %85, %86 : vector<2x128xf32>
    %88 = vector.extract_strided_slice %67 {offsets = [0, 64], sizes = [2, 32], strides = [1, 1]} : vector<2x128xf32> to vector<2x32xf32>
    %89 = math.tanh %88 : vector<2x32xf32>
    %90 = vector.extract_strided_slice %87 {offsets = [0, 0], sizes = [2, 32], strides = [1, 1]} : vector<2x128xf32> to vector<2x32xf32>
    %91 = vector.extract_strided_slice %87 {offsets = [0, 96], sizes = [2, 32], strides = [1, 1]} : vector<2x128xf32> to vector<2x32xf32>
    %92 = arith.mulf %90, %89 : vector<2x32xf32>
    %93 = vector.extract_strided_slice %87 {offsets = [0, 32], sizes = [2, 32], strides = [1, 1]} : vector<2x128xf32> to vector<2x32xf32>
    %94 = arith.mulf %93, %56 : vector<2x32xf32>
    %95 = arith.addf %94, %92 : vector<2x32xf32>
    %96 = math.tanh %95 : vector<2x32xf32>
    %97 = arith.mulf %91, %96 : vector<2x32xf32>
    %98 = vector.extract_strided_slice %10 {offsets = [0, 3, 0], sizes = [2, 1, 128], strides = [1, 1, 1]} : vector<2x8x128xf32> to vector<2x1x128xf32>
    %99 = vector.shape_cast %98 : vector<2x1x128xf32> to vector<2x128xf32>
    %cst_23 = arith.constant dense<0.000000e+00> : vector<2x128xf32>
    %100 = tpu.matmul %82, %0, %cst_23 {dimension_numbers = #tpu.dot_dimension_numbers<[1], [0], [0], [1], [0, 0, 1, 1], [], []>} : vector<2x32xf32>, vector<32x128xf32>, vector<2x128xf32> -> vector<2x128xf32>
    %101 = arith.addf %99, %100 : vector<2x128xf32>
    %cst_24 = arith.constant dense<0.000000e+00> : vector<2x128xf32>
    %102 = tpu.matmul %82, %1, %cst_24 {dimension_numbers = #tpu.dot_dimension_numbers<[1], [0], [0], [1], [0, 0, 1, 1], [], []>} : vector<2x32xf32>, vector<32x128xf32>, vector<2x128xf32> -> vector<2x128xf32>
    %103 = vector.broadcast %3 : vector<1x128xf32> to vector<2x128xf32>
    %104 = arith.addf %102, %103 : vector<2x128xf32>
    %cst_25 = arith.constant dense<0.000000e+00> : vector<2x128xf32>
    %105 = tpu.matmul %97, %2, %cst_25 {dimension_numbers = #tpu.dot_dimension_numbers<[1], [0], [0], [1], [0, 0, 1, 1], [], []>} : vector<2x32xf32>, vector<32x128xf32>, vector<2x128xf32> -> vector<2x128xf32>
    %106 = arith.addf %104, %105 : vector<2x128xf32>
    %107 = arith.negf %101 : vector<2x128xf32>
    %108 = math.exp %107 : vector<2x128xf32>
    %cst_26 = arith.constant 1.000000e+00 : f32
    %109 = vector.broadcast %cst_26 : f32 to vector<2x128xf32>
    %110 = arith.addf %109, %108 : vector<2x128xf32>
    %111 = arith.divf %109, %110 : vector<2x128xf32>
    %112 = vector.extract_strided_slice %101 {offsets = [0, 64], sizes = [2, 32], strides = [1, 1]} : vector<2x128xf32> to vector<2x32xf32>
    %113 = math.tanh %112 : vector<2x32xf32>
    %114 = vector.extract_strided_slice %111 {offsets = [0, 0], sizes = [2, 32], strides = [1, 1]} : vector<2x128xf32> to vector<2x32xf32>
    %115 = vector.extract_strided_slice %111 {offsets = [0, 96], sizes = [2, 32], strides = [1, 1]} : vector<2x128xf32> to vector<2x32xf32>
    %116 = arith.mulf %114, %113 : vector<2x32xf32>
    %117 = vector.extract_strided_slice %111 {offsets = [0, 32], sizes = [2, 32], strides = [1, 1]} : vector<2x128xf32> to vector<2x32xf32>
    %118 = arith.mulf %117, %80 : vector<2x32xf32>
    %119 = arith.addf %118, %116 : vector<2x32xf32>
    %120 = math.tanh %119 : vector<2x32xf32>
    %121 = arith.mulf %115, %120 : vector<2x32xf32>
    %122 = arith.negf %106 : vector<2x128xf32>
    %123 = math.exp %122 : vector<2x128xf32>
    %cst_27 = arith.constant 1.000000e+00 : f32
    %124 = vector.broadcast %cst_27 : f32 to vector<2x128xf32>
    %125 = arith.addf %124, %123 : vector<2x128xf32>
    %126 = arith.divf %124, %125 : vector<2x128xf32>
    %127 = vector.extract_strided_slice %106 {offsets = [0, 64], sizes = [2, 32], strides = [1, 1]} : vector<2x128xf32> to vector<2x32xf32>
    %128 = math.tanh %127 : vector<2x32xf32>
    %129 = vector.extract_strided_slice %126 {offsets = [0, 0], sizes = [2, 32], strides = [1, 1]} : vector<2x128xf32> to vector<2x32xf32>
    %130 = vector.extract_strided_slice %126 {offsets = [0, 96], sizes = [2, 32], strides = [1, 1]} : vector<2x128xf32> to vector<2x32xf32>
    %131 = arith.mulf %129, %128 : vector<2x32xf32>
    %132 = vector.extract_strided_slice %126 {offsets = [0, 32], sizes = [2, 32], strides = [1, 1]} : vector<2x128xf32> to vector<2x32xf32>
    %133 = arith.mulf %132, %95 : vector<2x32xf32>
    %134 = arith.addf %133, %131 : vector<2x32xf32>
    %135 = math.tanh %134 : vector<2x32xf32>
    %136 = arith.mulf %130, %135 : vector<2x32xf32>
    %137 = vector.extract_strided_slice %10 {offsets = [0, 4, 0], sizes = [2, 1, 128], strides = [1, 1, 1]} : vector<2x8x128xf32> to vector<2x1x128xf32>
    %138 = vector.shape_cast %137 : vector<2x1x128xf32> to vector<2x128xf32>
    %cst_28 = arith.constant dense<0.000000e+00> : vector<2x128xf32>
    %139 = tpu.matmul %121, %0, %cst_28 {dimension_numbers = #tpu.dot_dimension_numbers<[1], [0], [0], [1], [0, 0, 1, 1], [], []>} : vector<2x32xf32>, vector<32x128xf32>, vector<2x128xf32> -> vector<2x128xf32>
    %140 = arith.addf %138, %139 : vector<2x128xf32>
    %cst_29 = arith.constant dense<0.000000e+00> : vector<2x128xf32>
    %141 = tpu.matmul %121, %1, %cst_29 {dimension_numbers = #tpu.dot_dimension_numbers<[1], [0], [0], [1], [0, 0, 1, 1], [], []>} : vector<2x32xf32>, vector<32x128xf32>, vector<2x128xf32> -> vector<2x128xf32>
    %142 = vector.broadcast %3 : vector<1x128xf32> to vector<2x128xf32>
    %143 = arith.addf %141, %142 : vector<2x128xf32>
    %cst_30 = arith.constant dense<0.000000e+00> : vector<2x128xf32>
    %144 = tpu.matmul %136, %2, %cst_30 {dimension_numbers = #tpu.dot_dimension_numbers<[1], [0], [0], [1], [0, 0, 1, 1], [], []>} : vector<2x32xf32>, vector<32x128xf32>, vector<2x128xf32> -> vector<2x128xf32>
    %145 = arith.addf %143, %144 : vector<2x128xf32>
    %146 = arith.negf %140 : vector<2x128xf32>
    %147 = math.exp %146 : vector<2x128xf32>
    %cst_31 = arith.constant 1.000000e+00 : f32
    %148 = vector.broadcast %cst_31 : f32 to vector<2x128xf32>
    %149 = arith.addf %148, %147 : vector<2x128xf32>
    %150 = arith.divf %148, %149 : vector<2x128xf32>
    %151 = vector.extract_strided_slice %140 {offsets = [0, 64], sizes = [2, 32], strides = [1, 1]} : vector<2x128xf32> to vector<2x32xf32>
    %152 = math.tanh %151 : vector<2x32xf32>
    %153 = vector.extract_strided_slice %150 {offsets = [0, 0], sizes = [2, 32], strides = [1, 1]} : vector<2x128xf32> to vector<2x32xf32>
    %154 = vector.extract_strided_slice %150 {offsets = [0, 96], sizes = [2, 32], strides = [1, 1]} : vector<2x128xf32> to vector<2x32xf32>
    %155 = arith.mulf %153, %152 : vector<2x32xf32>
    %156 = vector.extract_strided_slice %150 {offsets = [0, 32], sizes = [2, 32], strides = [1, 1]} : vector<2x128xf32> to vector<2x32xf32>
    %157 = arith.mulf %156, %119 : vector<2x32xf32>
    %158 = arith.addf %157, %155 : vector<2x32xf32>
    %159 = math.tanh %158 : vector<2x32xf32>
    %160 = arith.mulf %154, %159 : vector<2x32xf32>
    %161 = arith.negf %145 : vector<2x128xf32>
    %162 = math.exp %161 : vector<2x128xf32>
    %cst_32 = arith.constant 1.000000e+00 : f32
    %163 = vector.broadcast %cst_32 : f32 to vector<2x128xf32>
    %164 = arith.addf %163, %162 : vector<2x128xf32>
    %165 = arith.divf %163, %164 : vector<2x128xf32>
    %166 = vector.extract_strided_slice %145 {offsets = [0, 64], sizes = [2, 32], strides = [1, 1]} : vector<2x128xf32> to vector<2x32xf32>
    %167 = math.tanh %166 : vector<2x32xf32>
    %168 = vector.extract_strided_slice %165 {offsets = [0, 0], sizes = [2, 32], strides = [1, 1]} : vector<2x128xf32> to vector<2x32xf32>
    %169 = vector.extract_strided_slice %165 {offsets = [0, 96], sizes = [2, 32], strides = [1, 1]} : vector<2x128xf32> to vector<2x32xf32>
    %170 = arith.mulf %168, %167 : vector<2x32xf32>
    %171 = vector.extract_strided_slice %165 {offsets = [0, 32], sizes = [2, 32], strides = [1, 1]} : vector<2x128xf32> to vector<2x32xf32>
    %172 = arith.mulf %171, %134 : vector<2x32xf32>
    %173 = arith.addf %172, %170 : vector<2x32xf32>
    %174 = math.tanh %173 : vector<2x32xf32>
    %175 = arith.mulf %169, %174 : vector<2x32xf32>
    %176 = vector.extract_strided_slice %10 {offsets = [0, 5, 0], sizes = [2, 1, 128], strides = [1, 1, 1]} : vector<2x8x128xf32> to vector<2x1x128xf32>
    %177 = vector.shape_cast %176 : vector<2x1x128xf32> to vector<2x128xf32>
    %cst_33 = arith.constant dense<0.000000e+00> : vector<2x128xf32>
    %178 = tpu.matmul %160, %0, %cst_33 {dimension_numbers = #tpu.dot_dimension_numbers<[1], [0], [0], [1], [0, 0, 1, 1], [], []>} : vector<2x32xf32>, vector<32x128xf32>, vector<2x128xf32> -> vector<2x128xf32>
    %179 = arith.addf %177, %178 : vector<2x128xf32>
    %cst_34 = arith.constant dense<0.000000e+00> : vector<2x128xf32>
    %180 = tpu.matmul %160, %1, %cst_34 {dimension_numbers = #tpu.dot_dimension_numbers<[1], [0], [0], [1], [0, 0, 1, 1], [], []>} : vector<2x32xf32>, vector<32x128xf32>, vector<2x128xf32> -> vector<2x128xf32>
    %181 = vector.broadcast %3 : vector<1x128xf32> to vector<2x128xf32>
    %182 = arith.addf %180, %181 : vector<2x128xf32>
    %cst_35 = arith.constant dense<0.000000e+00> : vector<2x128xf32>
    %183 = tpu.matmul %175, %2, %cst_35 {dimension_numbers = #tpu.dot_dimension_numbers<[1], [0], [0], [1], [0, 0, 1, 1], [], []>} : vector<2x32xf32>, vector<32x128xf32>, vector<2x128xf32> -> vector<2x128xf32>
    %184 = arith.addf %182, %183 : vector<2x128xf32>
    %185 = arith.negf %179 : vector<2x128xf32>
    %186 = math.exp %185 : vector<2x128xf32>
    %cst_36 = arith.constant 1.000000e+00 : f32
    %187 = vector.broadcast %cst_36 : f32 to vector<2x128xf32>
    %188 = arith.addf %187, %186 : vector<2x128xf32>
    %189 = arith.divf %187, %188 : vector<2x128xf32>
    %190 = vector.extract_strided_slice %179 {offsets = [0, 64], sizes = [2, 32], strides = [1, 1]} : vector<2x128xf32> to vector<2x32xf32>
    %191 = math.tanh %190 : vector<2x32xf32>
    %192 = vector.extract_strided_slice %189 {offsets = [0, 0], sizes = [2, 32], strides = [1, 1]} : vector<2x128xf32> to vector<2x32xf32>
    %193 = vector.extract_strided_slice %189 {offsets = [0, 96], sizes = [2, 32], strides = [1, 1]} : vector<2x128xf32> to vector<2x32xf32>
    %194 = arith.mulf %192, %191 : vector<2x32xf32>
    %195 = vector.extract_strided_slice %189 {offsets = [0, 32], sizes = [2, 32], strides = [1, 1]} : vector<2x128xf32> to vector<2x32xf32>
    %196 = arith.mulf %195, %158 : vector<2x32xf32>
    %197 = arith.addf %196, %194 : vector<2x32xf32>
    %198 = math.tanh %197 : vector<2x32xf32>
    %199 = arith.mulf %193, %198 : vector<2x32xf32>
    %200 = arith.negf %184 : vector<2x128xf32>
    %201 = math.exp %200 : vector<2x128xf32>
    %cst_37 = arith.constant 1.000000e+00 : f32
    %202 = vector.broadcast %cst_37 : f32 to vector<2x128xf32>
    %203 = arith.addf %202, %201 : vector<2x128xf32>
    %204 = arith.divf %202, %203 : vector<2x128xf32>
    %205 = vector.extract_strided_slice %184 {offsets = [0, 64], sizes = [2, 32], strides = [1, 1]} : vector<2x128xf32> to vector<2x32xf32>
    %206 = math.tanh %205 : vector<2x32xf32>
    %207 = vector.extract_strided_slice %204 {offsets = [0, 0], sizes = [2, 32], strides = [1, 1]} : vector<2x128xf32> to vector<2x32xf32>
    %208 = vector.extract_strided_slice %204 {offsets = [0, 96], sizes = [2, 32], strides = [1, 1]} : vector<2x128xf32> to vector<2x32xf32>
    %209 = arith.mulf %207, %206 : vector<2x32xf32>
    %210 = vector.extract_strided_slice %204 {offsets = [0, 32], sizes = [2, 32], strides = [1, 1]} : vector<2x128xf32> to vector<2x32xf32>
    %211 = arith.mulf %210, %173 : vector<2x32xf32>
    %212 = arith.addf %211, %209 : vector<2x32xf32>
    %213 = math.tanh %212 : vector<2x32xf32>
    %214 = arith.mulf %208, %213 : vector<2x32xf32>
    %215 = vector.extract_strided_slice %10 {offsets = [0, 6, 0], sizes = [2, 1, 128], strides = [1, 1, 1]} : vector<2x8x128xf32> to vector<2x1x128xf32>
    %216 = vector.shape_cast %215 : vector<2x1x128xf32> to vector<2x128xf32>
    %cst_38 = arith.constant dense<0.000000e+00> : vector<2x128xf32>
    %217 = tpu.matmul %199, %0, %cst_38 {dimension_numbers = #tpu.dot_dimension_numbers<[1], [0], [0], [1], [0, 0, 1, 1], [], []>} : vector<2x32xf32>, vector<32x128xf32>, vector<2x128xf32> -> vector<2x128xf32>
    %218 = arith.addf %216, %217 : vector<2x128xf32>
    %cst_39 = arith.constant dense<0.000000e+00> : vector<2x128xf32>
    %219 = tpu.matmul %199, %1, %cst_39 {dimension_numbers = #tpu.dot_dimension_numbers<[1], [0], [0], [1], [0, 0, 1, 1], [], []>} : vector<2x32xf32>, vector<32x128xf32>, vector<2x128xf32> -> vector<2x128xf32>
    %220 = vector.broadcast %3 : vector<1x128xf32> to vector<2x128xf32>
    %221 = arith.addf %219, %220 : vector<2x128xf32>
    %cst_40 = arith.constant dense<0.000000e+00> : vector<2x128xf32>
    %222 = tpu.matmul %214, %2, %cst_40 {dimension_numbers = #tpu.dot_dimension_numbers<[1], [0], [0], [1], [0, 0, 1, 1], [], []>} : vector<2x32xf32>, vector<32x128xf32>, vector<2x128xf32> -> vector<2x128xf32>
    %223 = arith.addf %221, %222 : vector<2x128xf32>
    %224 = arith.negf %218 : vector<2x128xf32>
    %225 = math.exp %224 : vector<2x128xf32>
    %cst_41 = arith.constant 1.000000e+00 : f32
    %226 = vector.broadcast %cst_41 : f32 to vector<2x128xf32>
    %227 = arith.addf %226, %225 : vector<2x128xf32>
    %228 = arith.divf %226, %227 : vector<2x128xf32>
    %229 = vector.extract_strided_slice %218 {offsets = [0, 64], sizes = [2, 32], strides = [1, 1]} : vector<2x128xf32> to vector<2x32xf32>
    %230 = math.tanh %229 : vector<2x32xf32>
    %231 = vector.extract_strided_slice %228 {offsets = [0, 0], sizes = [2, 32], strides = [1, 1]} : vector<2x128xf32> to vector<2x32xf32>
    %232 = vector.extract_strided_slice %228 {offsets = [0, 96], sizes = [2, 32], strides = [1, 1]} : vector<2x128xf32> to vector<2x32xf32>
    %233 = arith.mulf %231, %230 : vector<2x32xf32>
    %234 = vector.extract_strided_slice %228 {offsets = [0, 32], sizes = [2, 32], strides = [1, 1]} : vector<2x128xf32> to vector<2x32xf32>
    %235 = arith.mulf %234, %197 : vector<2x32xf32>
    %236 = arith.addf %235, %233 : vector<2x32xf32>
    %237 = math.tanh %236 : vector<2x32xf32>
    %238 = arith.mulf %232, %237 : vector<2x32xf32>
    %239 = arith.negf %223 : vector<2x128xf32>
    %240 = math.exp %239 : vector<2x128xf32>
    %cst_42 = arith.constant 1.000000e+00 : f32
    %241 = vector.broadcast %cst_42 : f32 to vector<2x128xf32>
    %242 = arith.addf %241, %240 : vector<2x128xf32>
    %243 = arith.divf %241, %242 : vector<2x128xf32>
    %244 = vector.extract_strided_slice %223 {offsets = [0, 64], sizes = [2, 32], strides = [1, 1]} : vector<2x128xf32> to vector<2x32xf32>
    %245 = math.tanh %244 : vector<2x32xf32>
    %246 = vector.extract_strided_slice %243 {offsets = [0, 0], sizes = [2, 32], strides = [1, 1]} : vector<2x128xf32> to vector<2x32xf32>
    %247 = vector.extract_strided_slice %243 {offsets = [0, 96], sizes = [2, 32], strides = [1, 1]} : vector<2x128xf32> to vector<2x32xf32>
    %248 = arith.mulf %246, %245 : vector<2x32xf32>
    %249 = vector.extract_strided_slice %243 {offsets = [0, 32], sizes = [2, 32], strides = [1, 1]} : vector<2x128xf32> to vector<2x32xf32>
    %250 = arith.mulf %249, %212 : vector<2x32xf32>
    %251 = arith.addf %250, %248 : vector<2x32xf32>
    %252 = math.tanh %251 : vector<2x32xf32>
    %253 = arith.mulf %247, %252 : vector<2x32xf32>
    %254 = vector.extract_strided_slice %10 {offsets = [0, 7, 0], sizes = [2, 1, 128], strides = [1, 1, 1]} : vector<2x8x128xf32> to vector<2x1x128xf32>
    %255 = vector.shape_cast %254 : vector<2x1x128xf32> to vector<2x128xf32>
    %cst_43 = arith.constant dense<0.000000e+00> : vector<2x128xf32>
    %256 = tpu.matmul %238, %0, %cst_43 {dimension_numbers = #tpu.dot_dimension_numbers<[1], [0], [0], [1], [0, 0, 1, 1], [], []>} : vector<2x32xf32>, vector<32x128xf32>, vector<2x128xf32> -> vector<2x128xf32>
    %257 = arith.addf %255, %256 : vector<2x128xf32>
    %cst_44 = arith.constant dense<0.000000e+00> : vector<2x128xf32>
    %258 = tpu.matmul %238, %1, %cst_44 {dimension_numbers = #tpu.dot_dimension_numbers<[1], [0], [0], [1], [0, 0, 1, 1], [], []>} : vector<2x32xf32>, vector<32x128xf32>, vector<2x128xf32> -> vector<2x128xf32>
    %259 = vector.broadcast %3 : vector<1x128xf32> to vector<2x128xf32>
    %260 = arith.addf %258, %259 : vector<2x128xf32>
    %cst_45 = arith.constant dense<0.000000e+00> : vector<2x128xf32>
    %261 = tpu.matmul %253, %2, %cst_45 {dimension_numbers = #tpu.dot_dimension_numbers<[1], [0], [0], [1], [0, 0, 1, 1], [], []>} : vector<2x32xf32>, vector<32x128xf32>, vector<2x128xf32> -> vector<2x128xf32>
    %262 = arith.addf %260, %261 : vector<2x128xf32>
    %263 = arith.negf %257 : vector<2x128xf32>
    %264 = math.exp %263 : vector<2x128xf32>
    %cst_46 = arith.constant 1.000000e+00 : f32
    %265 = vector.broadcast %cst_46 : f32 to vector<2x128xf32>
    %266 = arith.addf %265, %264 : vector<2x128xf32>
    %267 = arith.divf %265, %266 : vector<2x128xf32>
    %268 = vector.extract_strided_slice %257 {offsets = [0, 64], sizes = [2, 32], strides = [1, 1]} : vector<2x128xf32> to vector<2x32xf32>
    %269 = math.tanh %268 : vector<2x32xf32>
    %270 = vector.extract_strided_slice %267 {offsets = [0, 0], sizes = [2, 32], strides = [1, 1]} : vector<2x128xf32> to vector<2x32xf32>
    %271 = vector.extract_strided_slice %267 {offsets = [0, 96], sizes = [2, 32], strides = [1, 1]} : vector<2x128xf32> to vector<2x32xf32>
    %272 = arith.mulf %270, %269 : vector<2x32xf32>
    %273 = vector.extract_strided_slice %267 {offsets = [0, 32], sizes = [2, 32], strides = [1, 1]} : vector<2x128xf32> to vector<2x32xf32>
    %274 = arith.mulf %273, %236 : vector<2x32xf32>
    %275 = arith.addf %274, %272 : vector<2x32xf32>
    %276 = math.tanh %275 : vector<2x32xf32>
    %277 = arith.mulf %271, %276 : vector<2x32xf32>
    %278 = arith.negf %262 : vector<2x128xf32>
    %279 = math.exp %278 : vector<2x128xf32>
    %cst_47 = arith.constant 1.000000e+00 : f32
    %280 = vector.broadcast %cst_47 : f32 to vector<2x128xf32>
    %281 = arith.addf %280, %279 : vector<2x128xf32>
    %282 = arith.divf %280, %281 : vector<2x128xf32>
    %283 = vector.extract_strided_slice %262 {offsets = [0, 64], sizes = [2, 32], strides = [1, 1]} : vector<2x128xf32> to vector<2x32xf32>
    %284 = math.tanh %283 : vector<2x32xf32>
    %285 = vector.extract_strided_slice %282 {offsets = [0, 0], sizes = [2, 32], strides = [1, 1]} : vector<2x128xf32> to vector<2x32xf32>
    %286 = vector.extract_strided_slice %282 {offsets = [0, 96], sizes = [2, 32], strides = [1, 1]} : vector<2x128xf32> to vector<2x32xf32>
    %287 = arith.mulf %285, %284 : vector<2x32xf32>
    %288 = vector.extract_strided_slice %282 {offsets = [0, 32], sizes = [2, 32], strides = [1, 1]} : vector<2x128xf32> to vector<2x32xf32>
    %289 = arith.mulf %288, %251 : vector<2x32xf32>
    %290 = arith.addf %289, %287 : vector<2x32xf32>
    %291 = math.tanh %290 : vector<2x32xf32>
    %292 = arith.mulf %286, %291 : vector<2x32xf32>
    %cst_48 = arith.constant dense<0.000000e+00> : vector<2x128xf32>
    %293 = tpu.matmul %277, %1, %cst_48 {dimension_numbers = #tpu.dot_dimension_numbers<[1], [0], [0], [1], [0, 0, 1, 1], [], []>} : vector<2x32xf32>, vector<32x128xf32>, vector<2x128xf32> -> vector<2x128xf32>
    %294 = vector.broadcast %3 : vector<1x128xf32> to vector<2x128xf32>
    %295 = arith.addf %293, %294 : vector<2x128xf32>
    %cst_49 = arith.constant dense<0.000000e+00> : vector<2x128xf32>
    %296 = tpu.matmul %292, %2, %cst_49 {dimension_numbers = #tpu.dot_dimension_numbers<[1], [0], [0], [1], [0, 0, 1, 1], [], []>} : vector<2x32xf32>, vector<32x128xf32>, vector<2x128xf32> -> vector<2x128xf32>
    %297 = arith.addf %295, %296 : vector<2x128xf32>
    %298 = arith.negf %297 : vector<2x128xf32>
    %299 = math.exp %298 : vector<2x128xf32>
    %cst_50 = arith.constant 1.000000e+00 : f32
    %300 = vector.broadcast %cst_50 : f32 to vector<2x128xf32>
    %301 = arith.addf %300, %299 : vector<2x128xf32>
    %302 = arith.divf %300, %301 : vector<2x128xf32>
    %303 = vector.extract_strided_slice %297 {offsets = [0, 64], sizes = [2, 32], strides = [1, 1]} : vector<2x128xf32> to vector<2x32xf32>
    %304 = math.tanh %303 : vector<2x32xf32>
    %305 = vector.extract_strided_slice %302 {offsets = [0, 0], sizes = [2, 32], strides = [1, 1]} : vector<2x128xf32> to vector<2x32xf32>
    %306 = vector.extract_strided_slice %302 {offsets = [0, 96], sizes = [2, 32], strides = [1, 1]} : vector<2x128xf32> to vector<2x32xf32>
    %307 = arith.mulf %305, %304 : vector<2x32xf32>
    %308 = vector.extract_strided_slice %302 {offsets = [0, 32], sizes = [2, 32], strides = [1, 1]} : vector<2x128xf32> to vector<2x32xf32>
    %309 = arith.mulf %308, %290 : vector<2x32xf32>
    %310 = arith.addf %309, %307 : vector<2x32xf32>
    %311 = math.tanh %310 : vector<2x32xf32>
    %312 = arith.mulf %306, %311 : vector<2x32xf32>
    %313 = tpu.concatenate %58, %97, %136, %175, %214, %253, %292, %312 in 0 : vector<2x32xf32>, vector<2x32xf32>, vector<2x32xf32>, vector<2x32xf32>, vector<2x32xf32>, vector<2x32xf32>, vector<2x32xf32>, vector<2x32xf32> -> vector<16x32xf32>
    %c0_51 = arith.constant 0 : index
    %c0_52 = arith.constant 0 : index
    %314 = vector.load %arg7[%c0_51, %c0_52] : memref<32x16xf32, #tpu.memory_space<vmem>>, vector<32x16xf32>
    %cst_53 = arith.constant dense<0.000000e+00> : vector<16x16xf32>
    %315 = tpu.matmul %313, %314, %cst_53 {dimension_numbers = #tpu.dot_dimension_numbers<[1], [0], [0], [1], [0, 0, 1, 1], [], []>} : vector<16x32xf32>, vector<32x16xf32>, vector<16x16xf32> -> vector<16x16xf32>
    %c0_54 = arith.constant 0 : index
    %c0_55 = arith.constant 0 : index
    %316 = vector.load %arg8[%c0_54, %c0_55] : memref<1x16xf32, #tpu.memory_space<vmem>>, vector<1x16xf32>
    %317 = vector.broadcast %316 : vector<1x16xf32> to vector<16x16xf32>
    %318 = arith.addf %315, %317 : vector<16x16xf32>
    %cst_56 = arith.constant 0.000000e+00 : f32
    %319 = vector.broadcast %cst_56 : f32 to vector<16x16xf32>
    %320 = arith.maximumf %318, %319 : vector<16x16xf32>
    %c0_57 = arith.constant 0 : index
    %321 = memref.load %arg9[%c0_57] : memref<8xf32, #tpu.memory_space<smem>>
    %322 = vector.extract_strided_slice %320 {offsets = [0, 0], sizes = [2, 16], strides = [1, 1]} : vector<16x16xf32> to vector<2x16xf32>
    %323 = vector.broadcast %321 : f32 to vector<2x16xf32>
    %324 = arith.mulf %323, %322 : vector<2x16xf32>
    %c1 = arith.constant 1 : index
    %325 = memref.load %arg9[%c1] : memref<8xf32, #tpu.memory_space<smem>>
    %326 = vector.extract_strided_slice %320 {offsets = [2, 0], sizes = [2, 16], strides = [1, 1]} : vector<16x16xf32> to vector<2x16xf32>
    %327 = vector.broadcast %325 : f32 to vector<2x16xf32>
    %328 = arith.mulf %327, %326 : vector<2x16xf32>
    %329 = arith.addf %324, %328 : vector<2x16xf32>
    %c2 = arith.constant 2 : index
    %330 = memref.load %arg9[%c2] : memref<8xf32, #tpu.memory_space<smem>>
    %331 = vector.extract_strided_slice %320 {offsets = [4, 0], sizes = [2, 16], strides = [1, 1]} : vector<16x16xf32> to vector<2x16xf32>
    %332 = vector.broadcast %330 : f32 to vector<2x16xf32>
    %333 = arith.mulf %332, %331 : vector<2x16xf32>
    %334 = arith.addf %329, %333 : vector<2x16xf32>
    %c3 = arith.constant 3 : index
    %335 = memref.load %arg9[%c3] : memref<8xf32, #tpu.memory_space<smem>>
    %336 = vector.extract_strided_slice %320 {offsets = [6, 0], sizes = [2, 16], strides = [1, 1]} : vector<16x16xf32> to vector<2x16xf32>
    %337 = vector.broadcast %335 : f32 to vector<2x16xf32>
    %338 = arith.mulf %337, %336 : vector<2x16xf32>
    %339 = arith.addf %334, %338 : vector<2x16xf32>
    %c4 = arith.constant 4 : index
    %340 = memref.load %arg9[%c4] : memref<8xf32, #tpu.memory_space<smem>>
    %341 = vector.extract_strided_slice %320 {offsets = [8, 0], sizes = [2, 16], strides = [1, 1]} : vector<16x16xf32> to vector<2x16xf32>
    %342 = vector.broadcast %340 : f32 to vector<2x16xf32>
    %343 = arith.mulf %342, %341 : vector<2x16xf32>
    %344 = arith.addf %339, %343 : vector<2x16xf32>
    %c5 = arith.constant 5 : index
    %345 = memref.load %arg9[%c5] : memref<8xf32, #tpu.memory_space<smem>>
    %346 = vector.extract_strided_slice %320 {offsets = [10, 0], sizes = [2, 16], strides = [1, 1]} : vector<16x16xf32> to vector<2x16xf32>
    %347 = vector.broadcast %345 : f32 to vector<2x16xf32>
    %348 = arith.mulf %347, %346 : vector<2x16xf32>
    %349 = arith.addf %344, %348 : vector<2x16xf32>
    %c6 = arith.constant 6 : index
    %350 = memref.load %arg9[%c6] : memref<8xf32, #tpu.memory_space<smem>>
    %351 = vector.extract_strided_slice %320 {offsets = [12, 0], sizes = [2, 16], strides = [1, 1]} : vector<16x16xf32> to vector<2x16xf32>
    %352 = vector.broadcast %350 : f32 to vector<2x16xf32>
    %353 = arith.mulf %352, %351 : vector<2x16xf32>
    %354 = arith.addf %349, %353 : vector<2x16xf32>
    %c7 = arith.constant 7 : index
    %355 = memref.load %arg9[%c7] : memref<8xf32, #tpu.memory_space<smem>>
    %356 = vector.extract_strided_slice %320 {offsets = [14, 0], sizes = [2, 16], strides = [1, 1]} : vector<16x16xf32> to vector<2x16xf32>
    %357 = vector.broadcast %355 : f32 to vector<2x16xf32>
    %358 = arith.mulf %357, %356 : vector<2x16xf32>
    %359 = arith.addf %354, %358 : vector<2x16xf32>
    %c0_58 = arith.constant 0 : index
    %360 = memref.load %arg10[%c0_58] : memref<1xf32, #tpu.memory_space<smem>>
    %361 = vector.broadcast %360 : f32 to vector<2x16xf32>
    %362 = arith.addf %359, %361 : vector<2x16xf32>
    %cst_59 = arith.constant 0.000000e+00 : f32
    %363 = vector.broadcast %cst_59 : f32 to vector<2x16xf32>
    %364 = arith.maximumf %362, %363 : vector<2x16xf32>
    %c0_60 = arith.constant 0 : index
    %c0_61 = arith.constant 0 : index
    %365 = vector.load %arg11[%c0_60, %c0_61] : memref<2x16xf32, #tpu.memory_space<vmem>>, vector<2x16xf32>
    tpu.vector_store %arg11[%c0_60, %c0_61], %364 {strides = array<i32>} : memref<2x16xf32, #tpu.memory_space<vmem>>, vector<2x16xf32>,
    return
  }
}

</mosaic_0001>

<bundles_post_ra>
// kernel: tpu_custom_call.1
= control target key start
LH: loop header
LB: loop body
LE: loop exit
PB: predicated region body
PF: predicated region fallthrough
CT: control target
= control target key end

     0   :  { %17 = vsyncpa [#allocation4], 0  ;;  %s4225_s0 = inlined_call_operand.hbm [shape: f32[16,16], index: 0, kind: input, shape index: {}]   ;;  %s4226_s1 = inlined_call_operand.hbm [shape: f32[16,128], index: 1, kind: input, shape index: {}]   ;;  %s4227_s2 = inlined_call_operand.vmem [shape: f32[32,128], index: 2, kind: input, shape index: {}]   ;;  %s4228_s3 = inlined_call_operand.vmem [shape: f32[1,128], index: 3, kind: input, shape index: {}]   ;;  %s4229_s4 = inlined_call_operand.vmem [shape: f32[32,128], index: 4, kind: input, shape index: {}]   ;;  %s4230_s5 = inlined_call_operand.hbm [shape: f32[32,128], index: 5, kind: input, shape index: {}]   ;;  %s4231_s6 = inlined_call_operand.vmem [shape: f32[1,128], index: 6, kind: input, shape index: {}]   ;;  %s4232_s7 = inlined_call_operand.vmem [shape: f32[32,16], index: 7, kind: input, shape index: {}]   ;;  %s4233_s8 = inlined_call_operand.vmem [shape: f32[1,16], index: 8, kind: input, shape index: {}]   ;;  %s4234_s9 = inlined_call_operand.vmem [shape: f32[8], index: 9, kind: input, shape index: {}]   ;;  %s4235_s10 = inlined_call_operand.<no memory space> [shape: f32[1], index: 10, kind: input, shape index: {}]   ;;  %s4236_s11 = inlined_call_operand.hbm [shape: f32[2,16], index: 11, kind: output, shape index: {}]  }
   0x1   :  { %18 = vsyncpa [#allocation8], 0 }
   0x2   :  { %19 = vsyncpa [#allocation6], 0 }
   0x3   :  { %20 = vsyncpa [#allocation5], 0  ;;  %s3627_s17 = smov [#allocation7]   ;;  %s3628_s19 = smov [#allocation3]  }
   0x4   :  { %s38_s18 = sshll.u32 %s3627_s17, 4  ;;  %s26_s20 = sshll.u32 %s3628_s19, 4  ;;  %s39_s18 = int_to_ptr.vmem [resolvable:$true] %s38_s18  ;;  %s3700_s20 = int_to_ptr.vmem [resolvable:$true] %s26_s20 }
   0x5   :  { %s3519_s23 = scalar_lea.hbm %s4226_s1, 256 }
   0x6   :  { %p3520_p0 = scmp.ne.s32.totalorder %s4226_s1, %s3519_s23  ;;  %p3523_p1 = scmp.lt.u32.totalorder %s3519_s23, %s4226_s1 }
   0x8   :  { %p3525_p2 = pnand %p3523_p1, %p3520_p0 }
   0xa   :  { %3528 = shalt.err (!%p3525_p2)
}
   0xb   :  { %s3529_s28 = scalar_lea.vmem %s39_s18, 256  ;;  %p3534_p4 = scmp.lt.s32.totalorder %s39_s18, %s39_s18 }
   0xc   :  { %p3530_p3 = scmp.ne.s32.totalorder %s39_s18, %s3529_s28  ;;  %p3535_p5 = scmp.lt.s32.totalorder %s3529_s28, %s3529_s28 }
   0xe   :  { %p3536_p6 = por %p3535_p5, %p3534_p4 }
  0x10   :  { %p3537_p7 = pnand %p3536_p6, %p3530_p3 }
  0x12   :  { %3540 = shalt.err (!%p3537_p7)
}
  0x13   :  { %s3629_s29 = smov 128   ;;  %s3630_s30 = smov 8  }
  0x14   :  { %44 = dma.hbm_to_vmem [thread:$0]  %s4226_s1, 256, %s39_s18, [#allocation8], %s3629_s29, %s3629_s29, %s3630_s30  }
  0x15   :  { %s3541_s16 = scalar_lea.hbm %s4225_s0, 256 }
  0x16   :  { %p3542_p8 = scmp.ne.s32.totalorder %s4225_s0, %s3541_s16  ;;  %p3545_p9 = scmp.lt.u32.totalorder %s3541_s16, %s4225_s0 }
  0x18   :  { %p3547_p10 = pnand %p3545_p9, %p3542_p8 }
  0x1a   :  { %3550 = shalt.err (!%p3547_p10)
}
  0x1b   :  { %s3551_s23 = scalar_lea.vmem %s3700_s20, 256  ;;  %p3556_p12 = scmp.lt.s32.totalorder %s3700_s20, %s3700_s20 }
  0x1c   :  { %p3552_p11 = scmp.ne.s32.totalorder %s3700_s20, %s3551_s23  ;;  %p3557_p13 = scmp.lt.s32.totalorder %s3551_s23, %s3551_s23 }
  0x1e   :  { %p3558_p0 = por %p3557_p13, %p3556_p12 }
  0x20   :  { %p3559_p1 = pnand %p3558_p0, %p3552_p11 }
  0x22   :  { %3562 = shalt.err (!%p3559_p1)
}
  0x23   :  { %32 = dma.hbm_to_vmem [thread:$0]  %s4225_s0, 256, %s3700_s20, [#allocation4], %s3629_s29, %s3629_s29, %s3630_s30  }
  0x24   :  { %s75_s26 = sshll.u32 %s4234_s9, 4  ;;  %s3631_s27 = smov [#allocation9]   ;;  %s76_s26 = int_to_ptr.vmem [resolvable:$true] %s75_s26 }
  0x25   :  { %s56_s28 = sshll.u32 %s3631_s27, 4  ;;  %s3563_s14 = scalar_lea.hbm %s4230_s5, 512  ;;  %s57_s28 = int_to_ptr.vmem [resolvable:$true] %s56_s28 }
  0x26   :  { %p3564_p2 = scmp.ne.s32.totalorder %s4230_s5, %s3563_s14  ;;  %p3567_p3 = scmp.lt.u32.totalorder %s3563_s14, %s4230_s5 }
  0x28   :  { %p3569_p4 = pnand %p3567_p3, %p3564_p2 }
  0x2a   :  { %3572 = shalt.err (!%p3569_p4)
}
  0x2b   :  { %s3573_s0 = scalar_lea.vmem %s57_s28, 512  ;;  %p3578_p6 = scmp.lt.s32.totalorder %s57_s28, %s57_s28 }
  0x2c   :  { %p3574_p5 = scmp.ne.s32.totalorder %s57_s28, %s3573_s0  ;;  %p3579_p7 = scmp.lt.s32.totalorder %s3573_s0, %s3573_s0 }
  0x2e   :  { %p3580_p8 = por %p3579_p7, %p3578_p6 }
  0x30   :  { %p3581_p9 = pnand %p3580_p8, %p3574_p5 }
  0x32   :  { %3584 = shalt.err (!%p3581_p9)
}
  0x33   :  { %62 = dma.hbm_to_vmem [thread:$0]  %s4230_s5, 512, %s57_s28, [#allocation8], %s3629_s29, %s3629_s29, %s3630_s30  }
  0x34   :  { %s3585_s21 = scalar_lea.vmem %s76_s26, 16  ;;  %p3590_p11 = scmp.lt.s32.totalorder %s76_s26, %s76_s26 }
  0x35   :  { %p3586_p10 = scmp.ne.s32.totalorder %s76_s26, %s3585_s21  ;;  %p3591_p12 = scmp.lt.s32.totalorder %s3585_s21, %s3585_s21 }
  0x37   :  { %p3592_p13 = por %p3591_p12, %p3590_p11 }
  0x39   :  { %p3593_p0 = pnand %p3592_p13, %p3586_p10 }
  0x3b   :  { %3596 = shalt.err (!%p3593_p0)
}
  0x3c   :  { %s3632_s22 = smov [#allocation10]  }
  0x3d   :  { %78 = dma.vmem_to_smem %s76_s26, 16, %s3632_s22, [#allocation6]  }
  0x3e   :  { %3619 = dma.done.wait [#allocation4], 256  }
  0x3f   :  { %3620 = vsyncadd [#allocation4], 4294967040 }
  0x40   :  { %3621 = dma.done.wait [#allocation8], 768  }
  0x41   :  { %3622 = vsyncadd [#allocation8], 4294966528 }
  0x42   :  { %3623 = dma.done.wait [#allocation6], 16  }
  0x43   :  { %3624 = vsyncadd [#allocation6], 4294967280 }
  0x44   :  { %93 = sfence }
  0x45   :  { %v109_v0 = vld [vmem:[#allocation7] sm:$0xff]  ;;  %v110_v1 = vld [vmem:[#allocation7 + $0x8] sm:$0xff]  ;;  %v107_v2 = vld [vmem:[#allocation3] sm:$0xff]  ;;  %vm118_vm0 = vcmask 130048   ;;  %s3633_s30 = smov 64   ;;  %v3634_v27 = vmov 0.0|0.0  }
  0x46   :  { %v3148_v3 = vpack.c.bf16 %v110_v1, %v109_v0  ;;  %2892 = vmatprep.mubr.msk.f32.mxu0 %vm118_vm0, %v107_v2  ;;  %v108_v4 = vld [vmem:[#allocation3 + $0x8] sm:$0xff]  ;;  %v2708_v5 = vld [vmem:[%s4228_s3] ss:$0 sm:$0xff]  ;;  %3152 = vmatprep.subr.bf16.mxu1 %v3634_v27  ;;  %v96_v30 = vld [vmem:[%s4227_s2 + $0x10] sm:$0xff]  ;;  %vm3635_vm1 = vmmov 0   ;;  %v3636_v35 = vmov 0.0  }
  0x47   :  { %v94_v24 = vld [vmem:[%s4227_s2] sm:$0xff]  ;;  %v95_v25 = vld [vmem:[%s4227_s2 + $0x8] sm:$0xff]  ;;  %v97_v31 = vld [vmem:[%s4227_s2 + $0x18] sm:$0xff]  ;;  %2903 = vmatprep.mubr.msk.f32.mxu1 %vm3635_vm1, %v3636_v35  ;;  %s3637_s2 = smov 96   ;;  %vm239_vm2 = vcmask 1041409   ;;  %vm243_vm3 = vcmask 261120  }
  0x48   :  { %3149 = vmatprep.subr.bf16.mxu0 %v3148_v3  ;;  %v98_v26 = vld [vmem:[%s4229_s4] sm:$0xff]  ;;  %v3785_v28 = vpack.c.bf16 %v95_v25, %v94_v24  ;;  %v99_v29 = vld [vmem:[%s4229_s4 + $0x8] sm:$0xff]  ;;  %v100_v33 = vld [vmem:[%s4229_s4 + $0x10] sm:$0xff]  ;;  %v3809_v36 = vpack.c.bf16 %v97_v31, %v96_v30  ;;  %vm2529_vm4 = vcmask 1041408   ;;  %vm2531_vm5 = vcmask 1043456   ;;  %s2761_s24 = sld [smem:[#allocation10 + $0x1]] }
  0x49   :  { %3151 = vmatpush3.bf16.msra.mxu0 %v3148_v3  ;;  %v3796_v32 = vpack.c.bf16 %v99_v29, %v98_v26  ;;  %v101_v34 = vld [vmem:[%s4229_s4 + $0x18] sm:$0xff]  ;;  %s3638_s4 = smov 32   ;;  %v3849_v0 = vld [vmem:[%s4231_s6] ss:$0 sm:$0xff]  ;;  %vm2533_vm6 = vcmask 1045504   ;;  %s2636_s25 = sld [smem:[#allocation10]] }
  0x4a   :  { %3158 = vmatprep.subr.bf16.mxu0 %v3634_v27  ;;  %3154 = vmatpush3.bf16.msra.mxu1 %v3785_v28  ;;  %v3813_v37 = vpack.c.bf16 %v101_v34, %v100_v33  ;;  %s2763_s26 = sld [smem:[#allocation10 + $0x3]]  ;;  %s2764_s12 = sld [smem:[#allocation10 + $0x4]]  ;;  %vm2689_vm7 = vcmask 123904  }
  0x4b   :  { %3155 = vmatprep.subr.bf16.mxu1 %v3634_v27  ;;  %s2766_s13 = sld [smem:[#allocation10 + $0x6]]  ;;  %s2767_s14 = sld [smem:[#allocation10 + $0x7]] }
  0x4c   :  { %2893 = vmatmul.mubr.msk.f32.vlgmr.msra.gmra.mrb[0].mxu0 %vm118_vm0, %v108_v4  ;;  %s3639_s16 = smov [#allocation11]  }
  0x4d   :  { %2914 = vmatprep.mubr.msk.f32.mxu0 %vm3635_vm1, %v3636_v35  ;;  %3160 = vmatpush3.bf16.msra.mxu0 %v3796_v32  ;;  %s2697_s17 = sshll.u32 %s3639_s16, 4  ;;  %s2698_s17 = int_to_ptr.vmem [resolvable:$true] %s2697_s17 }
  0x4e   :  { %3161 = vmatprep.subr.bf16.mxu0 %v3634_v27  ;;  %3157 = vmatpush3.bf16.msra.mxu1 %v3809_v36  ;;  %s3597_s19 = scalar_lea.vmem %s2698_s17, 32  ;;  %p3602_p2 = scmp.lt.s32.totalorder %s2698_s17, %s2698_s17 }
  0x4f   :  { %3164 = vmatprep.subr.bf16.mxu1 %v3634_v27  ;;  %p3598_p1 = scmp.ne.s32.totalorder %s2698_s17, %s3597_s19  ;;  %p3603_p3 = scmp.lt.s32.totalorder %s3597_s19, %s3597_s19 }
  0x51   :  { %3163 = vmatpush3.bf16.msra.mxu0 %v3813_v37  ;;  %p3604_p4 = por %p3603_p3, %p3602_p2 }
  0x52   :  { %3170 = vmatprep.subr.bf16.mxu0 %v3634_v27 }
  0x53   :  { %p3605_p5 = pnand %p3604_p4, %p3598_p1 }
 0x11f   :  { %v2894_v6 = vpop.f32.mrb[0].mxu0 }
 0x120   :  { %v3758_v7 = vadd.f32 %v2894_v6, %v2708_v5  ;;  %v191_v8 = vpop.f32.mrb[1].mxu0 }
 0x121   :  { %v3760_v9 = vadd.f32 %v2708_v5, %v191_v8 }
 0x122   :  { %3326 = vtanh.f32 %v3758_v7  ;;  %v2712_v12 = vmul.f32 -1.442695, %v3758_v7 }
 0x123   :  { %3328 = vtanh.f32 %v3760_v9  ;;  %v2711_v13 = vmul.f32 -1.442695, %v3760_v9 }
 0x124   :  { %3330 = vpow2.f32 %v2712_v12 }
 0x125   :  { %3332 = vpow2.f32 %v2711_v13 }
 0x12c   :  { %v3327_v10 = vpop.eup %3326 }
 0x12d   :  { %218 = vrot.lane.b32.xlu0 %v3327_v10, %s3633_s30  ;;  %v3329_v11 = vpop.eup %3328 }
 0x12e   :  { %v3331_v14 = vpop.eup %3330 }
 0x12f   :  { %v207_v15 = vadd.f32 1.0, %v3331_v14  ;;  %v3333_v16 = vpop.eup %3332 }
 0x130   :  { %v206_v17 = vadd.f32 1.0, %v3333_v16 }
 0x131   :  { %216 = vrot.lane.b32.xlu0 %v3329_v11, %s3633_s30  ;;  %3334 = vrcp.f32 %v207_v15 }
 0x132   :  { %3336 = vrcp.f32 %v206_v17 }
 0x13b   :  { %v3335_v18 = vpop.eup %3334 }
 0x13c   :  { %v3337_v21 = vpop.eup %3336 }
 0x19f   :  { %v219_v19 = vpop.permute.xlu0 %218 }
 0x1a0   :  { %v3768_v20 = vmul.f32 %v3335_v18, %v219_v19 }
 0x1a2   :  { %3338 = vtanh.f32 %v3768_v20  ;;  %v425_v56 = vrot.slane %v3768_v20, 7 }
 0x1a3   :  { %v217_v22 = vpop.permute.xlu0 %216 }
 0x1a4   :  { %v3771_v23 = vmul.f32 %v3337_v21, %v217_v22 }
 0x1a6   :  { %3340 = vtanh.f32 %v3771_v23  ;;  %v424_v57 = vrot.slane %v3771_v23, 7 }
 0x1ac   :  { %v3339_v38 = vpop.eup %3338 }
 0x1ad   :  { %230 = vrot.lane.b32.xlu1 %v3339_v38, %s3637_s2 }
 0x1b0   :  { %v3341_v39 = vpop.eup %3340 }
 0x1b1   :  { %228 = vrot.lane.b32.xlu1 %v3341_v39, %s3637_s2 }
 0x21f   :  { %v231_v40 = vpop.permute.xlu1 %230 }
 0x220   :  { %v235_v41 = vmul.f32 %v3335_v18, %v231_v40 }
 0x222   :  { %v238_v43 = vrot.slane %v235_v41, 7 }
 0x223   :  { %v229_v42 = vpop.permute.xlu1 %228 }
 0x224   :  { %v234_v44 = vmul.f32 %v3337_v21, %v229_v42  ;;  %v102_v42 = vld [vmem:[#allocation9] sm:$0xff] }
 0x226   :  { %v240_v45 = vsel %vm239_vm2, %v238_v43, %v234_v44  ;;  %v103_v43 = vld [vmem:[#allocation9 + $0x8] sm:$0xff] }
 0x227   :  { %241 = vrot.lane.b32.xlu0 %v240_v45, %s3638_s4  ;;  %v3873_v44 = vpack.c.bf16 %v103_v43, %v102_v42  ;;  %v104_v45 = vld [vmem:[#allocation9 + $0x10] sm:$0xff] }
 0x299   :  { %v242_v46 = vpop.permute.xlu0 %241 }
 0x29a   :  { %2904 = vmatmul.mubr.msk.f32.vlgmr.msra.gmra.mrb[0].mxu1 %vm243_vm3, %v242_v46  ;;  %2915 = vmatmul.mubr.msk.f32.vlgmr.msra.gmra.mrb[2].mxu0 %vm243_vm3, %v242_v46  ;;  %v105_v46 = vld [vmem:[#allocation9 + $0x18] sm:$0xff] }
 0x29b   :  { %3166 = vmatpush3.bf16.msra.mxu1 %v3785_v28  ;;  %3172 = vmatpush3.bf16.msra.mxu0 %v3796_v32 }
 0x29c   :  { %3167 = vmatprep.subr.bf16.mxu1 %v3634_v27  ;;  %3173 = vmatprep.subr.bf16.mxu0 %v3634_v27 }
 0x29d   :  { %2925 = vmatprep.mubr.msk.f32.mxu1 %vm3635_vm1, %v3636_v35  ;;  %2936 = vmatprep.mubr.msk.f32.mxu0 %vm3635_vm1, %v3636_v35 }
 0x29f   :  { %3169 = vmatpush3.bf16.msra.mxu1 %v3809_v36  ;;  %3175 = vmatpush3.bf16.msra.mxu0 %v3813_v37 }
 0x2a0   :  { %3176 = vmatprep.subr.bf16.mxu0 %v3634_v27  ;;  %3182 = vmatprep.subr.bf16.mxu1 %v3634_v27 }
 0x36d   :  { %v312_v47 = vpop.f32.mrb[0].mxu1  ;;  %v394_v48 = vpop.f32.mrb[2].mxu0 }
 0x36e   :  { %v317_v49 = vrot.slane %v312_v47, 7  ;;  %v321_v50 = vadd.f32 %v312_v47, %v3758_v7  ;;  %v2905_v51 = vpop.f32.mrb[1].mxu1  ;;  %v2916_v52 = vpop.f32.mrb[3].mxu0  ;;  %v395_v1 = vadd.f32 %v3849_v0, %v394_v48  ;;  %v3878_v48 = vpack.c.bf16 %v105_v46, %v104_v45 }
 0x370   :  { %v320_v53 = vadd.f32 %v317_v49, %v3760_v9  ;;  %3342 = vtanh.f32 %v321_v50  ;;  %v2717_v58 = vmul.f32 -1.442695, %v321_v50  ;;  %v2718_v11 = vmul.f32 -1.442695, %v395_v1 }
 0x372   :  { %3344 = vtanh.f32 %v320_v53  ;;  %v2716_v59 = vmul.f32 -1.442695, %v320_v53 }
 0x373   :  { %3346 = vpow2.f32 %v2717_v58 }
 0x374   :  { %3348 = vpow2.f32 %v2716_v59 }
 0x37a   :  { %v3343_v54 = vpop.eup %3342 }
 0x37b   :  { %416 = vrot.lane.b32.xlu0 %v3343_v54, %s3633_s30 }
 0x37c   :  { %v3345_v55 = vpop.eup %3344 }
 0x37d   :  { %414 = vrot.lane.b32.xlu1 %v3345_v55, %s3633_s30  ;;  %v3347_v60 = vpop.eup %3346 }
 0x37e   :  { %v3349_v61 = vpop.eup %3348  ;;  %v405_v62 = vadd.f32 1.0, %v3347_v60 }
 0x37f   :  { %428 = vrot.lane.b32.xlu0 %v425_v56, %s3638_s4  ;;  %v404_v63 = vadd.f32 1.0, %v3349_v61 }
 0x380   :  { %3350 = vrcp.f32 %v405_v62 }
 0x381   :  { %426 = vrot.lane.b32.xlu1 %v424_v57, %s3638_s4  ;;  %3352 = vrcp.f32 %v404_v63 }
 0x382   :  { %3354 = vtanh.f32 %v395_v1 }
 0x383   :  { %3356 = vpow2.f32 %v2718_v11 }
 0x38a   :  { %v3351_v2 = vpop.eup %3350 }
 0x38b   :  { %v3353_v5 = vpop.eup %3352 }
 0x38c   :  { %v3355_v10 = vpop.eup %3354 }
 0x38d   :  { %v3357_v12 = vpop.eup %3356 }
 0x38e   :  { %v459_v13 = vadd.f32 1.0, %v3357_v12 }
 0x390   :  { %3358 = vrcp.f32 %v459_v13 }
 0x39a   :  { %v3359_v22 = vpop.eup %3358 }
 0x3ed   :  { %v417_v3 = vpop.permute.xlu0 %416 }
 0x3ee   :  { %v421_v4 = vmul.f32 %v3351_v2, %v417_v3 }
 0x3ef   :  { %v415_v6 = vpop.permute.xlu1 %414 }
 0x3f0   :  { %438 = vrot.lane.b32.xlu0 %v421_v4, %s3638_s4  ;;  %v420_v8 = vmul.f32 %v3353_v5, %v415_v6 }
 0x3f1   :  { %v429_v14 = vpop.permute.xlu0 %428 }
 0x3f2   :  { %436 = vrot.lane.b32.xlu1 %v420_v8, %s3638_s4  ;;  %v433_v15 = vmul.f32 %v3351_v2, %v429_v14 }
 0x3f3   :  { %v427_v16 = vpop.permute.xlu1 %426 }
 0x3f4   :  { %v432_v19 = vmul.f32 %v3353_v5, %v427_v16 }
 0x3f6   :  { %464 = vrot.lane.b32.xlu1 %v3355_v10, %s3633_s30 }
 0x462   :  { %v439_v17 = vpop.permute.xlu0 %438 }
 0x463   :  { %v3855_v18 = vadd.f32 %v439_v17, %v433_v15 }
 0x464   :  { %v437_v20 = vpop.permute.xlu1 %436 }
 0x465   :  { %3360 = vtanh.f32 %v3855_v18  ;;  %v3858_v21 = vadd.f32 %v437_v20, %v432_v19 }
 0x467   :  { %3362 = vtanh.f32 %v3858_v21  ;;  %v731_v20 = vrot.slane %v3858_v21, 7 }
 0x468   :  { %v465_v23 = vpop.permute.xlu1 %464 }
 0x469   :  { %v3861_v24 = vmul.f32 %v3359_v22, %v465_v23 }
 0x46b   :  { %3364 = vtanh.f32 %v3861_v24 }
 0x46f   :  { %v3361_v25 = vpop.eup %3360 }
 0x470   :  { %450 = vrot.lane.b32.xlu1 %v3361_v25, %s3633_s30 }
 0x471   :  { %v3363_v26 = vpop.eup %3362 }
 0x472   :  { %448 = vrot.lane.b32.xlu0 %v3363_v26, %s3633_s30 }
 0x475   :  { %v3365_v29 = vpop.eup %3364 }
 0x476   :  { %470 = vrot.lane.b32.xlu0 %v3365_v29, %s3637_s2 }
 0x4e2   :  { %v451_v30 = vpop.permute.xlu1 %450 }
 0x4e3   :  { %v455_v34 = vmul.f32 %v3351_v2, %v451_v30 }
 0x4e4   :  { %v449_v31 = vpop.permute.xlu0 %448 }
 0x4e5   :  { %v454_v33 = vmul.f32 %v3353_v5, %v449_v31 }
 0x4e7   :  { %v476_v38 = vrot.slane %v454_v33, 1 }
 0x4e8   :  { %v471_v39 = vpop.permute.xlu0 %470 }
 0x4e9   :  { %v3867_v40 = vmul.f32 %v3359_v22, %v471_v39  ;;  %v477_v41 = vsel %vm239_vm2, %v455_v34, %v476_v38  ;;  %v732_v22 = vrot.slane %v3855_v18, 7 }
 0x4ea   :  { %478 = vrot.lane.b32.xlu1 %v477_v41, %s3638_s4 }
 0x4eb   :  { %630 = vrot.lane.b32.xlu0 %v3867_v40, %s3638_s4 }
 0x55c   :  { %v479_v47 = vpop.permute.xlu1 %478 }
 0x55d   :  { %2926 = vmatmul.mubr.msk.f32.vlgmr.msra.gmra.mrb[2].mxu1 %vm243_vm3, %v479_v47  ;;  %2937 = vmatmul.mubr.msk.f32.vlgmr.msra.gmra.mrb[4].mxu0 %vm243_vm3, %v479_v47  ;;  %v631_v49 = vpop.permute.xlu0 %630 }
 0x55e   :  { %3178 = vmatpush3.bf16.msra.mxu0 %v3873_v44  ;;  %2947 = vmatprep.mubr.msk.f32.mxu0 %vm3635_vm1, %v3636_v35 }
 0x55f   :  { %3179 = vmatprep.subr.bf16.mxu0 %v3634_v27  ;;  %3184 = vmatpush3.bf16.msra.mxu1 %v3785_v28 }
 0x560   :  { %3185 = vmatprep.subr.bf16.mxu1 %v3634_v27  ;;  %2958 = vmatprep.mubr.msk.f32.mxu1 %vm3635_vm1, %v3636_v35 }
 0x562   :  { %3181 = vmatpush3.bf16.msra.mxu0 %v3878_v48 }
 0x563   :  { %3187 = vmatpush3.bf16.msra.mxu1 %v3809_v36  ;;  %3200 = vmatprep.subr.bf16.mxu0 %v3634_v27 }
 0x564   :  { %3188 = vmatprep.subr.bf16.mxu1 %v3634_v27 }
 0x565   :  { %2948 = vmatmul.mubr.msk.f32.vlgmr.msra.gmra.mrb[4].mxu0 %vm243_vm3, %v631_v49 }
 0x566   :  { %3202 = vmatpush3.bf16.msra.mxu0 %v3785_v28  ;;  %2991 = vmatprep.mubr.msk.f32.mxu0 %vm3635_vm1, %v3636_v35 }
 0x567   :  { %3203 = vmatprep.subr.bf16.mxu0 %v3634_v27 }
 0x56a   :  { %3205 = vmatpush3.bf16.msra.mxu0 %v3809_v36 }
 0x56b   :  { %3206 = vmatprep.subr.bf16.mxu0 %v3634_v27 }
 0x630   :  { %v548_v50 = vpop.f32.mrb[2].mxu1 }
 0x631   :  { %v553_v51 = vrot.slane %v548_v50, 6  ;;  %v554_v52 = vrot.slane %v548_v50, 7  ;;  %v2927_v53 = vpop.f32.mrb[3].mxu1 }
 0x633   :  { %v557_v54 = vadd.f32 %v553_v51, %v3760_v9  ;;  %v558_v55 = vadd.f32 %v554_v52, %v3758_v7 }
 0x635   :  { %3366 = vtanh.f32 %v557_v54  ;;  %v2722_v62 = vmul.f32 -1.442695, %v557_v54  ;;  %v2723_v63 = vmul.f32 -1.442695, %v558_v55 }
 0x636   :  { %3368 = vtanh.f32 %v558_v55 }
 0x638   :  { %v700_v56 = vpop.f32.mrb[4].mxu0 }
 0x639   :  { %v3292_v57 = vadd.f32 %v3849_v0, %v700_v56  ;;  %v2949_v58 = vpop.f32.mrb[5].mxu0 }
 0x63b   :  { %3370 = vtanh.f32 %v3292_v57  ;;  %v2724_v1 = vmul.f32 -1.442695, %v3292_v57 }
 0x63c   :  { %3372 = vpow2.f32 %v2722_v62 }
 0x63d   :  { %3374 = vpow2.f32 %v2723_v63 }
 0x63e   :  { %3376 = vpow2.f32 %v2724_v1 }
 0x63f   :  { %v3367_v59 = vpop.eup %3366 }
 0x640   :  { %v3369_v60 = vpop.eup %3368  ;;  %721 = vrot.lane.b32.xlu1 %v3367_v59, %s3633_s30 }
 0x641   :  { %723 = vrot.lane.b32.xlu0 %v3369_v60, %s3633_s30 }
 0x645   :  { %v3371_v61 = vpop.eup %3370 }
 0x646   :  { %767 = vrot.lane.b32.xlu1 %v3371_v61, %s3633_s30  ;;  %v3373_v2 = vpop.eup %3372 }
 0x647   :  { %v3375_v3 = vpop.eup %3374  ;;  %v711_v4 = vadd.f32 1.0, %v3373_v2 }
 0x648   :  { %v712_v5 = vadd.f32 1.0, %v3375_v3  ;;  %v3377_v6 = vpop.eup %3376 }
 0x649   :  { %3378 = vrcp.f32 %v711_v4  ;;  %v762_v8 = vadd.f32 1.0, %v3377_v6 }
 0x64a   :  { %3380 = vrcp.f32 %v712_v5 }
 0x64b   :  { %3382 = vrcp.f32 %v762_v8 }
 0x653   :  { %v3379_v10 = vpop.eup %3378 }
 0x654   :  { %v3381_v12 = vpop.eup %3380  ;;  %v735_v23 = vmul.f32 %v3379_v10, %v731_v20 }
 0x655   :  { %v3383_v16 = vpop.eup %3382  ;;  %v736_v25 = vmul.f32 %v3381_v12, %v732_v22 }
 0x6b2   :  { %v722_v11 = vpop.permute.xlu1 %721 }
 0x6b3   :  { %v724_v13 = vpop.permute.xlu0 %723  ;;  %v727_v14 = vmul.f32 %v3379_v10, %v722_v11 }
 0x6b4   :  { %v728_v15 = vmul.f32 %v3381_v12, %v724_v13 }
 0x6b5   :  { %739 = vrot.lane.b32.xlu0 %v727_v14, %s3638_s4 }
 0x6b6   :  { %741 = vrot.lane.b32.xlu1 %v728_v15, %s3638_s4 }
 0x6b8   :  { %v768_v17 = vpop.permute.xlu1 %767 }
 0x6b9   :  { %v770_v19 = vmul.f32 %v3383_v16, %v768_v17  ;;  %772 = vrot.lane.b32.xlu0 %v3861_v24, %s3638_s4 }
 0x6bb   :  { %777 = vrot.lane.b32.xlu1 %v770_v19, %s3638_s4 }
 0x727   :  { %v740_v26 = vpop.permute.xlu0 %739 }
 0x728   :  { %v742_v29 = vpop.permute.xlu1 %741  ;;  %v3911_v30 = vadd.f32 %v740_v26, %v735_v23 }
 0x729   :  { %v3913_v31 = vadd.f32 %v742_v29, %v736_v25 }
 0x72a   :  { %3384 = vtanh.f32 %v3911_v30  ;;  %v1045_v26 = vrot.slane %v3911_v30, 7 }
 0x72b   :  { %3386 = vtanh.f32 %v3913_v31  ;;  %v773_v33 = vpop.permute.xlu0 %772  ;;  %v1046_v29 = vrot.slane %v3913_v31, 7 }
 0x72c   :  { %v775_v24 = vmul.f32 %v3383_v16, %v773_v33 }
 0x72d   :  { %v778_v34 = vpop.permute.xlu1 %777 }
 0x72e   :  { %v3917_v38 = vadd.f32 %v778_v34, %v775_v24 }
 0x730   :  { %3388 = vtanh.f32 %v3917_v38 }
 0x734   :  { %v3385_v18 = vpop.eup %3384 }
 0x735   :  { %v3387_v21 = vpop.eup %3386  ;;  %751 = vrot.lane.b32.xlu0 %v3385_v18, %s3633_s30 }
 0x736   :  { %753 = vrot.lane.b32.xlu1 %v3387_v21, %s3633_s30 }
 0x73a   :  { %v3389_v39 = vpop.eup %3388 }
 0x73b   :  { %783 = vrot.lane.b32.xlu0 %v3389_v39, %s3633_s30 }
 0x7a7   :  { %v752_v41 = vpop.permute.xlu0 %751 }
 0x7a8   :  { %v754_v42 = vpop.permute.xlu1 %753  ;;  %v757_v43 = vmul.f32 %v3379_v10, %v752_v41 }
 0x7a9   :  { %v758_v45 = vmul.f32 %v3381_v12, %v754_v42 }
 0x7aa   :  { %v789_v46 = vrot.slane %v757_v43, 2 }
 0x7ab   :  { %v790_v47 = vrot.slane %v758_v45, 1 }
 0x7ad   :  { %v791_v49 = vsel %vm239_vm2, %v790_v47, %v789_v46  ;;  %v784_v50 = vpop.permute.xlu0 %783 }
 0x7ae   :  { %792 = vrot.lane.b32.xlu1 %v791_v49, %s3638_s4  ;;  %v3925_v51 = vmul.f32 %v3383_v16, %v784_v50 }
 0x7b0   :  { %944 = vrot.lane.b32.xlu0 %v3925_v51, %s3638_s4 }
 0x820   :  { %v793_v52 = vpop.permute.xlu1 %792 }
 0x821   :  { %2959 = vmatmul.mubr.msk.f32.vlgmr.msra.gmra.mrb[4].mxu1 %vm243_vm3, %v793_v52 }
 0x822   :  { %3190 = vmatpush3.bf16.msra.mxu1 %v3796_v32  ;;  %2969 = vmatprep.mubr.msk.f32.mxu1 %vm3635_vm1, %v3636_v35  ;;  %v945_v53 = vpop.permute.xlu0 %944 }
 0x823   :  { %3191 = vmatprep.subr.bf16.mxu1 %v3634_v27 }
 0x826   :  { %3193 = vmatpush3.bf16.msra.mxu1 %v3813_v37 }
 0x827   :  { %3194 = vmatprep.subr.bf16.mxu1 %v3634_v27 }
 0x829   :  { %2970 = vmatmul.mubr.msk.f32.vlgmr.msra.gmra.mrb[6].mxu1 %vm243_vm3, %v793_v52 }
 0x82a   :  { %3196 = vmatpush3.bf16.msra.mxu1 %v3873_v44  ;;  %2980 = vmatprep.mubr.msk.f32.mxu1 %vm3635_vm1, %v3636_v35 }
 0x82b   :  { %3197 = vmatprep.subr.bf16.mxu1 %v3634_v27 }
 0x82e   :  { %3199 = vmatpush3.bf16.msra.mxu1 %v3878_v48 }
 0x82f   :  { %3218 = vmatprep.subr.bf16.mxu1 %v3634_v27 }
 0x831   :  { %2981 = vmatmul.mubr.msk.f32.vlgmr.msra.gmra.mrb[6].mxu1 %vm243_vm3, %v945_v53 }
 0x832   :  { %3220 = vmatpush3.bf16.msra.mxu1 %v3785_v28  ;;  %3024 = vmatprep.mubr.msk.f32.mxu1 %vm3635_vm1, %v3636_v35 }
 0x833   :  { %3221 = vmatprep.subr.bf16.mxu1 %v3634_v27 }
 0x836   :  { %3223 = vmatpush3.bf16.msra.mxu1 %v3809_v36 }
 0x837   :  { %3224 = vmatprep.subr.bf16.mxu1 %v3634_v27 }
 0x8f4   :  { %v862_v54 = vpop.f32.mrb[4].mxu1 }
 0x8f5   :  { %v867_v55 = vrot.slane %v862_v54, 5  ;;  %v868_v56 = vrot.slane %v862_v54, 6  ;;  %v2960_v57 = vpop.f32.mrb[5].mxu1  ;;  %v2516_v54 = vrot.slane %v3925_v51, 6 }
 0x8f7   :  { %v871_v58 = vadd.f32 %v867_v55, %v3760_v9  ;;  %v872_v59 = vadd.f32 %v868_v56, %v3758_v7 }
 0x8f9   :  { %3390 = vtanh.f32 %v871_v58  ;;  %v2728_v3 = vmul.f32 -1.442695, %v871_v58  ;;  %v2729_v4 = vmul.f32 -1.442695, %v872_v59  ;;  %v2530_v58 = vsel %vm2529_vm4, %v3867_v40, %v2516_v54 }
 0x8fa   :  { %3392 = vtanh.f32 %v872_v59 }
 0x903   :  { %v3391_v60 = vpop.eup %3390 }
 0x904   :  { %v3393_v61 = vpop.eup %3392  ;;  %v1014_v62 = vpop.f32.mrb[6].mxu1  ;;  %1035 = vrot.lane.b32.xlu1 %v3391_v60, %s3633_s30 }
 0x905   :  { %v3293_v63 = vadd.f32 %v3849_v0, %v1014_v62  ;;  %1037 = vrot.lane.b32.xlu0 %v3393_v61, %s3633_s30  ;;  %v2982_v1 = vpop.f32.mrb[7].mxu1 }
 0x907   :  { %3394 = vtanh.f32 %v3293_v63  ;;  %v2730_v6 = vmul.f32 -1.442695, %v3293_v63 }
 0x908   :  { %3396 = vpow2.f32 %v2728_v3 }
 0x909   :  { %3398 = vpow2.f32 %v2729_v4 }
 0x90a   :  { %3400 = vpow2.f32 %v2730_v6 }
 0x911   :  { %v3395_v2 = vpop.eup %3394 }
 0x912   :  { %1081 = vrot.lane.b32.xlu1 %v3395_v2, %s3633_s30  ;;  %v3397_v5 = vpop.eup %3396 }
 0x913   :  { %v3399_v8 = vpop.eup %3398  ;;  %v1025_v10 = vadd.f32 1.0, %v3397_v5 }
 0x914   :  { %v1026_v11 = vadd.f32 1.0, %v3399_v8  ;;  %v3401_v12 = vpop.eup %3400 }
 0x915   :  { %3402 = vrcp.f32 %v1025_v10  ;;  %v1076_v14 = vadd.f32 1.0, %v3401_v12 }
 0x916   :  { %3404 = vrcp.f32 %v1026_v11 }
 0x917   :  { %3406 = vrcp.f32 %v1076_v14 }
 0x91f   :  { %v3403_v13 = vpop.eup %3402 }
 0x920   :  { %v3405_v16 = vpop.eup %3404  ;;  %v1049_v33 = vmul.f32 %v3403_v13, %v1045_v26 }
 0x921   :  { %v3407_v22 = vpop.eup %3406  ;;  %v1050_v34 = vmul.f32 %v3405_v16, %v1046_v29 }
 0x922   :  { %v1085_v42 = vmul.f32 %v3407_v22, %v3917_v38 }
 0x976   :  { %v1036_v15 = vpop.permute.xlu1 %1035 }
 0x977   :  { %v1038_v17 = vpop.permute.xlu0 %1037  ;;  %v1041_v19 = vmul.f32 %v3403_v13, %v1036_v15 }
 0x978   :  { %v1042_v20 = vmul.f32 %v3405_v16, %v1038_v17 }
 0x979   :  { %1053 = vrot.lane.b32.xlu0 %v1041_v19, %s3638_s4 }
 0x97a   :  { %1055 = vrot.lane.b32.xlu1 %v1042_v20, %s3638_s4 }
 0x984   :  { %v1082_v23 = vpop.permute.xlu1 %1081 }
 0x985   :  { %v1084_v25 = vmul.f32 %v3407_v22, %v1082_v23 }
 0x987   :  { %1087 = vrot.lane.b32.xlu0 %v1084_v25, %s3638_s4 }
 0x9eb   :  { %v1054_v24 = vpop.permute.xlu0 %1053 }
 0x9ec   :  { %v3961_v18 = vadd.f32 %v1054_v24, %v1049_v33  ;;  %v1056_v21 = vpop.permute.xlu1 %1055 }
 0x9ed   :  { %v3963_v39 = vadd.f32 %v1056_v21, %v1050_v34 }
 0x9ee   :  { %3408 = vtanh.f32 %v3961_v18 }
 0x9ef   :  { %3410 = vtanh.f32 %v3963_v39 }
 0x9f8   :  { %v3409_v41 = vpop.eup %3408 }
 0x9f9   :  { %v3411_v43 = vpop.eup %3410  ;;  %v1088_v45 = vpop.permute.xlu0 %1087  ;;  %1065 = vrot.lane.b32.xlu1 %v3409_v41, %s3633_s30  ;;  %v1355_v41 = vrot.slane %v3961_v18, 7 }
 0x9fa   :  { %v3969_v30 = vadd.f32 %v1088_v45, %v1085_v42  ;;  %1067 = vrot.lane.b32.xlu0 %v3411_v43, %s3633_s30  ;;  %v1356_v42 = vrot.slane %v3963_v39, 7 }
 0x9fc   :  { %3412 = vtanh.f32 %v3969_v30 }
 0xa06   :  { %v3413_v31 = vpop.eup %3412 }
 0xa07   :  { %1093 = vrot.lane.b32.xlu1 %v3413_v31, %s3633_s30 }
 0xa6b   :  { %v1066_v46 = vpop.permute.xlu1 %1065 }
 0xa6c   :  { %v1071_v47 = vmul.f32 %v3403_v13, %v1066_v46  ;;  %v1068_v49 = vpop.permute.xlu0 %1067 }
 0xa6d   :  { %v1072_v50 = vmul.f32 %v3405_v16, %v1068_v49 }
 0xa6e   :  { %v1099_v52 = vrot.slane %v1071_v47, 3 }
 0xa6f   :  { %v1100_v53 = vrot.slane %v1072_v50, 2 }
 0xa71   :  { %v1101_v38 = vsel %vm239_vm2, %v1100_v53, %v1099_v52 }
 0xa72   :  { %1102 = vrot.lane.b32.xlu0 %v1101_v38, %s3638_s4 }
 0xa79   :  { %v1094_v55 = vpop.permute.xlu1 %1093 }
 0xa7a   :  { %v1096_v56 = vmul.f32 %v3407_v22, %v1094_v55 }
 0xa7c   :  { %v2518_v57 = vrot.slane %v1096_v56, 4  ;;  %1254 = vrot.lane.b32.xlu1 %v1096_v56, %s3638_s4 }
 0xa7e   :  { %v3981_v59 = vsel %vm2531_vm5, %v2530_v58, %v2518_v57 }
 0xae4   :  { %v1103_v60 = vpop.permute.xlu0 %1102 }
 0xae5   :  { %2992 = vmatmul.mubr.msk.f32.vlgmr.msra.gmra.mrb[6].mxu0 %vm243_vm3, %v1103_v60 }
 0xae6   :  { %3208 = vmatpush3.bf16.msra.mxu0 %v3796_v32  ;;  %3002 = vmatprep.mubr.msk.f32.mxu0 %vm3635_vm1, %v3636_v35 }
 0xae7   :  { %3209 = vmatprep.subr.bf16.mxu0 %v3634_v27 }
 0xaea   :  { %3211 = vmatpush3.bf16.msra.mxu0 %v3813_v37 }
 0xaeb   :  { %3212 = vmatprep.subr.bf16.mxu0 %v3634_v27 }
 0xaed   :  { %3003 = vmatmul.mubr.msk.f32.vlgmr.msra.gmra.mrb[8].mxu0 %vm243_vm3, %v1103_v60 }
 0xaee   :  { %3214 = vmatpush3.bf16.msra.mxu0 %v3873_v44  ;;  %3013 = vmatprep.mubr.msk.f32.mxu0 %vm3635_vm1, %v3636_v35  ;;  %v1255_v40 = vpop.permute.xlu1 %1254 }
 0xaef   :  { %3215 = vmatprep.subr.bf16.mxu0 %v3634_v27 }
 0xaf2   :  { %3217 = vmatpush3.bf16.msra.mxu0 %v3878_v48 }
 0xaf3   :  { %3236 = vmatprep.subr.bf16.mxu0 %v3634_v27 }
 0xaf5   :  { %3014 = vmatmul.mubr.msk.f32.vlgmr.msra.gmra.mrb[8].mxu0 %vm243_vm3, %v1255_v40 }
 0xaf6   :  { %3238 = vmatpush3.bf16.msra.mxu0 %v3785_v28  ;;  %3057 = vmatprep.mubr.msk.f32.mxu0 %vm3635_vm1, %v3636_v35 }
 0xaf7   :  { %3239 = vmatprep.subr.bf16.mxu0 %v3634_v27 }
 0xafa   :  { %3241 = vmatpush3.bf16.msra.mxu0 %v3809_v36 }
 0xafb   :  { %3242 = vmatprep.subr.bf16.mxu0 %v3634_v27 }
 0xbb8   :  { %v1172_v51 = vpop.f32.mrb[6].mxu0 }
 0xbb9   :  { %v1177_v61 = vrot.slane %v1172_v51, 4  ;;  %v1178_v62 = vrot.slane %v1172_v51, 5  ;;  %v2993_v63 = vpop.f32.mrb[7].mxu0 }
 0xbbb   :  { %v1181_v1 = vadd.f32 %v1177_v61, %v3760_v9  ;;  %v1182_v2 = vadd.f32 %v1178_v62, %v3758_v7 }
 0xbbd   :  { %3414 = vtanh.f32 %v1181_v1  ;;  %v2734_v11 = vmul.f32 -1.442695, %v1181_v1  ;;  %v2735_v12 = vmul.f32 -1.442695, %v1182_v2 }
 0xbbe   :  { %3416 = vtanh.f32 %v1182_v2 }
 0xbc7   :  { %v3415_v3 = vpop.eup %3414 }
 0xbc8   :  { %v3417_v4 = vpop.eup %3416  ;;  %v1324_v5 = vpop.f32.mrb[8].mxu0  ;;  %1345 = vrot.lane.b32.xlu0 %v3415_v3, %s3633_s30 }
 0xbc9   :  { %v3294_v6 = vadd.f32 %v3849_v0, %v1324_v5  ;;  %1347 = vrot.lane.b32.xlu1 %v3417_v4, %s3633_s30  ;;  %v3015_v8 = vpop.f32.mrb[9].mxu0 }
 0xbcb   :  { %3418 = vtanh.f32 %v3294_v6  ;;  %v2736_v14 = vmul.f32 -1.442695, %v3294_v6 }
 0xbcc   :  { %3420 = vpow2.f32 %v2734_v11 }
 0xbcd   :  { %3422 = vpow2.f32 %v2735_v12 }
 0xbce   :  { %3424 = vpow2.f32 %v2736_v14 }
 0xbd5   :  { %v3419_v10 = vpop.eup %3418 }
 0xbd6   :  { %1391 = vrot.lane.b32.xlu0 %v3419_v10, %s3633_s30  ;;  %v3421_v13 = vpop.eup %3420 }
 0xbd7   :  { %v3423_v15 = vpop.eup %3422  ;;  %v1335_v16 = vadd.f32 1.0, %v3421_v13 }
 0xbd8   :  { %v1336_v17 = vadd.f32 1.0, %v3423_v15  ;;  %v3425_v19 = vpop.eup %3424 }
 0xbd9   :  { %3426 = vrcp.f32 %v1335_v16  ;;  %v1386_v22 = vadd.f32 1.0, %v3425_v19 }
 0xbda   :  { %3428 = vrcp.f32 %v1336_v17 }
 0xbdb   :  { %3430 = vrcp.f32 %v1386_v22 }
 0xbe3   :  { %v3427_v20 = vpop.eup %3426 }
 0xbe4   :  { %v3429_v25 = vpop.eup %3428  ;;  %v1359_v43 = vmul.f32 %v3427_v20, %v1355_v41 }
 0xbe5   :  { %v3431_v24 = vpop.eup %3430  ;;  %v1360_v31 = vmul.f32 %v3429_v25, %v1356_v42 }
 0xbe6   :  { %v1395_v52 = vmul.f32 %v3431_v24, %v3969_v30 }
 0xc3a   :  { %v1346_v23 = vpop.permute.xlu0 %1345 }
 0xc3b   :  { %v1348_v26 = vpop.permute.xlu1 %1347  ;;  %v1351_v29 = vmul.f32 %v3427_v20, %v1346_v23 }
 0xc3c   :  { %v1352_v33 = vmul.f32 %v3429_v25, %v1348_v26 }
 0xc3d   :  { %1363 = vrot.lane.b32.xlu1 %v1351_v29, %s3638_s4 }
 0xc3e   :  { %1365 = vrot.lane.b32.xlu0 %v1352_v33, %s3638_s4 }
 0xc48   :  { %v1392_v34 = vpop.permute.xlu0 %1391 }
 0xc49   :  { %v1394_v21 = vmul.f32 %v3431_v24, %v1392_v34 }
 0xc4b   :  { %1397 = vrot.lane.b32.xlu1 %v1394_v21, %s3638_s4 }
 0xcaf   :  { %v1364_v45 = vpop.permute.xlu1 %1363 }
 0xcb0   :  { %v4015_v46 = vadd.f32 %v1364_v45, %v1359_v43  ;;  %v1366_v47 = vpop.permute.xlu0 %1365 }
 0xcb1   :  { %v4017_v49 = vadd.f32 %v1366_v47, %v1360_v31 }
 0xcb2   :  { %3432 = vtanh.f32 %v4015_v46  ;;  %v1665_v43 = vrot.slane %v4015_v46, 7 }
 0xcb3   :  { %3434 = vtanh.f32 %v4017_v49  ;;  %v1666_v45 = vrot.slane %v4017_v49, 7 }
 0xcbc   :  { %v3433_v50 = vpop.eup %3432 }
 0xcbd   :  { %v3435_v53 = vpop.eup %3434  ;;  %v1398_v38 = vpop.permute.xlu1 %1397  ;;  %1375 = vrot.lane.b32.xlu0 %v3433_v50, %s3633_s30 }
 0xcbe   :  { %v4023_v18 = vadd.f32 %v1398_v38, %v1395_v52  ;;  %1377 = vrot.lane.b32.xlu1 %v3435_v53, %s3633_s30 }
 0xcc0   :  { %3436 = vtanh.f32 %v4023_v18 }
 0xcca   :  { %v3437_v39 = vpop.eup %3436 }
 0xccb   :  { %1403 = vrot.lane.b32.xlu0 %v3437_v39, %s3633_s30 }
 0xd2f   :  { %v1376_v54 = vpop.permute.xlu0 %1375 }
 0xd30   :  { %v1381_v55 = vmul.f32 %v3427_v20, %v1376_v54  ;;  %v1378_v56 = vpop.permute.xlu1 %1377 }
 0xd31   :  { %v1382_v57 = vmul.f32 %v3429_v25, %v1378_v56 }
 0xd32   :  { %v1409_v58 = vrot.slane %v1381_v55, 4 }
 0xd33   :  { %v1410_v60 = vrot.slane %v1382_v57, 3 }
 0xd35   :  { %v1411_v30 = vsel %vm239_vm2, %v1410_v60, %v1409_v58 }
 0xd36   :  { %1412 = vrot.lane.b32.xlu1 %v1411_v30, %s3638_s4 }
 0xd3d   :  { %v1404_v40 = vpop.permute.xlu0 %1403 }
 0xd3e   :  { %v1406_v51 = vmul.f32 %v3431_v24, %v1404_v40 }
 0xd40   :  { %v2520_v61 = vrot.slane %v1406_v51, 2  ;;  %1564 = vrot.lane.b32.xlu0 %v1406_v51, %s3638_s4 }
 0xd42   :  { %v4033_v62 = vsel %vm2533_vm6, %v3981_v59, %v2520_v61 }
 0xda8   :  { %v1413_v63 = vpop.permute.xlu1 %1412 }
 0xda9   :  { %3025 = vmatmul.mubr.msk.f32.vlgmr.msra.gmra.mrb[8].mxu1 %vm243_vm3, %v1413_v63 }
 0xdaa   :  { %3226 = vmatpush3.bf16.msra.mxu1 %v3796_v32  ;;  %3035 = vmatprep.mubr.msk.f32.mxu1 %vm3635_vm1, %v3636_v35 }
 0xdab   :  { %3227 = vmatprep.subr.bf16.mxu1 %v3634_v27 }
 0xdae   :  { %3229 = vmatpush3.bf16.msra.mxu1 %v3813_v37 }
 0xdaf   :  { %3230 = vmatprep.subr.bf16.mxu1 %v3634_v27 }
 0xdb1   :  { %3036 = vmatmul.mubr.msk.f32.vlgmr.msra.gmra.mrb[10].mxu1 %vm243_vm3, %v1413_v63 }
 0xdb2   :  { %3232 = vmatpush3.bf16.msra.mxu1 %v3873_v44  ;;  %3046 = vmatprep.mubr.msk.f32.mxu1 %vm3635_vm1, %v3636_v35  ;;  %v1565_v59 = vpop.permute.xlu0 %1564 }
 0xdb3   :  { %3233 = vmatprep.subr.bf16.mxu1 %v3634_v27 }
 0xdb6   :  { %3235 = vmatpush3.bf16.msra.mxu1 %v3878_v48 }
 0xdb7   :  { %3254 = vmatprep.subr.bf16.mxu1 %v3634_v27 }
 0xdb9   :  { %3047 = vmatmul.mubr.msk.f32.vlgmr.msra.gmra.mrb[10].mxu1 %vm243_vm3, %v1565_v59 }
 0xdba   :  { %3256 = vmatpush3.bf16.msra.mxu1 %v3785_v28  ;;  %3090 = vmatprep.mubr.msk.f32.mxu1 %vm3635_vm1, %v3636_v35 }
 0xdbb   :  { %3257 = vmatprep.subr.bf16.mxu1 %v3634_v27 }
 0xdbe   :  { %3259 = vmatpush3.bf16.msra.mxu1 %v3809_v36 }
 0xdbf   :  { %3260 = vmatprep.subr.bf16.mxu1 %v3634_v27 }
 0xe7c   :  { %v1482_v1 = vpop.f32.mrb[8].mxu1 }
 0xe7d   :  { %v1487_v2 = vrot.slane %v1482_v1, 3  ;;  %v1488_v3 = vrot.slane %v1482_v1, 4  ;;  %v3026_v4 = vpop.f32.mrb[9].mxu1 }
 0xe7f   :  { %v1491_v5 = vadd.f32 %v1487_v2, %v3760_v9  ;;  %v1492_v6 = vadd.f32 %v1488_v3, %v3758_v7 }
 0xe81   :  { %3438 = vtanh.f32 %v1491_v5  ;;  %v2740_v13 = vmul.f32 -1.442695, %v1491_v5  ;;  %v2741_v14 = vmul.f32 -1.442695, %v1492_v6 }
 0xe82   :  { %3440 = vtanh.f32 %v1492_v6 }
 0xe8b   :  { %v3439_v28 = vpop.eup %3438 }
 0xe8c   :  { %v3441_v8 = vpop.eup %3440  ;;  %v1634_v10 = vpop.f32.mrb[10].mxu1  ;;  %1655 = vrot.lane.b32.xlu1 %v3439_v28, %s3633_s30 }
 0xe8d   :  { %v3295_v11 = vadd.f32 %v3849_v0, %v1634_v10  ;;  %1657 = vrot.lane.b32.xlu0 %v3441_v8, %s3633_s30  ;;  %v3048_v36 = vpop.f32.mrb[11].mxu1 }
 0xe8f   :  { %3442 = vtanh.f32 %v3295_v11  ;;  %v2742_v16 = vmul.f32 -1.442695, %v3295_v11 }
 0xe90   :  { %3444 = vpow2.f32 %v2740_v13 }
 0xe91   :  { %3446 = vpow2.f32 %v2741_v14 }
 0xe92   :  { %3448 = vpow2.f32 %v2742_v16 }
 0xe99   :  { %v3443_v12 = vpop.eup %3442 }
 0xe9a   :  { %1701 = vrot.lane.b32.xlu1 %v3443_v12, %s3633_s30  ;;  %v3445_v15 = vpop.eup %3444 }
 0xe9b   :  { %v3447_v17 = vpop.eup %3446  ;;  %v1645_v19 = vadd.f32 1.0, %v3445_v15 }
 0xe9c   :  { %v1646_v20 = vadd.f32 1.0, %v3447_v17  ;;  %v3449_v22 = vpop.eup %3448 }
 0xe9d   :  { %3450 = vrcp.f32 %v1645_v19  ;;  %v1696_v25 = vadd.f32 1.0, %v3449_v22 }
 0xe9e   :  { %3452 = vrcp.f32 %v1646_v20 }
 0xe9f   :  { %3454 = vrcp.f32 %v1696_v25 }
 0xea7   :  { %v3451_v23 = vpop.eup %3450 }
 0xea8   :  { %v3453_v29 = vpop.eup %3452  ;;  %v1669_v31 = vmul.f32 %v3451_v23, %v1665_v43 }
 0xea9   :  { %v3455_v21 = vpop.eup %3454  ;;  %v1670_v50 = vmul.f32 %v3453_v29, %v1666_v45 }
 0xeaa   :  { %v1705_v54 = vmul.f32 %v3455_v21, %v4023_v18 }
 0xefe   :  { %v1656_v26 = vpop.permute.xlu1 %1655 }
 0xeff   :  { %v1658_v33 = vpop.permute.xlu0 %1657  ;;  %v1661_v24 = vmul.f32 %v3451_v23, %v1656_v26 }
 0xf00   :  { %v1662_v34 = vmul.f32 %v3453_v29, %v1658_v33 }
 0xf01   :  { %1673 = vrot.lane.b32.xlu0 %v1661_v24, %s3638_s4 }
 0xf02   :  { %1675 = vrot.lane.b32.xlu1 %v1662_v34, %s3638_s4 }
 0xf0c   :  { %v1702_v41 = vpop.permute.xlu1 %1701 }
 0xf0d   :  { %v1704_v42 = vmul.f32 %v3455_v21, %v1702_v41 }
 0xf0f   :  { %1707 = vrot.lane.b32.xlu0 %v1704_v42, %s3638_s4 }
 0xf73   :  { %v1674_v47 = vpop.permute.xlu0 %1673 }
 0xf74   :  { %v4067_v52 = vadd.f32 %v1674_v47, %v1669_v31  ;;  %v1676_v53 = vpop.permute.xlu1 %1675 }
 0xf75   :  { %v4069_v38 = vadd.f32 %v1676_v53, %v1670_v50 }
 0xf76   :  { %3456 = vtanh.f32 %v4067_v52  ;;  %v1975_v43 = vrot.slane %v4067_v52, 7 }
 0xf77   :  { %3458 = vtanh.f32 %v4069_v38  ;;  %v1976_v45 = vrot.slane %v4069_v38, 7 }
 0xf80   :  { %v3457_v39 = vpop.eup %3456 }
 0xf81   :  { %v3459_v55 = vpop.eup %3458  ;;  %v1708_v56 = vpop.permute.xlu0 %1707  ;;  %1685 = vrot.lane.b32.xlu1 %v3457_v39, %s3633_s30 }
 0xf82   :  { %v4075_v46 = vadd.f32 %v1708_v56, %v1705_v54  ;;  %1687 = vrot.lane.b32.xlu0 %v3459_v55, %s3633_s30 }
 0xf84   :  { %3460 = vtanh.f32 %v4075_v46 }
 0xf8e   :  { %v3461_v49 = vpop.eup %3460 }
 0xf8f   :  { %1713 = vrot.lane.b32.xlu1 %v3461_v49, %s3633_s30 }
 0xff3   :  { %v1686_v57 = vpop.permute.xlu1 %1685 }
 0xff4   :  { %v1691_v58 = vmul.f32 %v3451_v23, %v1686_v57  ;;  %v1688_v60 = vpop.permute.xlu0 %1687 }
 0xff5   :  { %v1692_v30 = vmul.f32 %v3453_v29, %v1688_v60 }
 0xff6   :  { %v1719_v40 = vrot.slane %v1691_v58, 5 }
 0xff7   :  { %v1720_v51 = vrot.slane %v1692_v30, 4 }
 0xff9   :  { %v1721_v18 = vsel %vm239_vm2, %v1720_v51, %v1719_v40 }
 0xffa   :  { %1722 = vrot.lane.b32.xlu0 %v1721_v18, %s3638_s4 }
0x1001   :  { %v1714_v61 = vpop.permute.xlu1 %1713 }
0x1002   :  { %v4082_v63 = vmul.f32 %v3455_v21, %v1714_v61 }
0x1004   :  { %1874 = vrot.lane.b32.xlu1 %v4082_v63, %s3638_s4 }
0x106c   :  { %v1723_v59 = vpop.permute.xlu0 %1722 }
0x106d   :  { %3058 = vmatmul.mubr.msk.f32.vlgmr.msra.gmra.mrb[10].mxu0 %vm243_vm3, %v1723_v59 }
0x106e   :  { %3244 = vmatpush3.bf16.msra.mxu0 %v3796_v32  ;;  %3068 = vmatprep.mubr.msk.f32.mxu0 %vm3635_vm1, %v3636_v35 }
0x106f   :  { %3245 = vmatprep.subr.bf16.mxu0 %v3634_v27 }
0x1072   :  { %3247 = vmatpush3.bf16.msra.mxu0 %v3813_v37 }
0x1073   :  { %3248 = vmatprep.subr.bf16.mxu0 %v3634_v27 }
0x1075   :  { %3069 = vmatmul.mubr.msk.f32.vlgmr.msra.gmra.mrb[12].mxu0 %vm243_vm3, %v1723_v59 }
0x1076   :  { %3250 = vmatpush3.bf16.msra.mxu0 %v3873_v44  ;;  %3079 = vmatprep.mubr.msk.f32.mxu0 %vm3635_vm1, %v3636_v35  ;;  %v1875_v1 = vpop.permute.xlu1 %1874 }
0x1077   :  { %3251 = vmatprep.subr.bf16.mxu0 %v3634_v27 }
0x107a   :  { %3253 = vmatpush3.bf16.msra.mxu0 %v3878_v48 }
0x107b   :  { %3272 = vmatprep.subr.bf16.mxu0 %v3634_v27 }
0x107d   :  { %3080 = vmatmul.mubr.msk.f32.vlgmr.msra.gmra.mrb[12].mxu0 %vm243_vm3, %v1875_v1 }
0x107e   :  { %3274 = vmatpush3.bf16.msra.mxu0 %v3796_v32  ;;  %3123 = vmatprep.mubr.msk.f32.mxu0 %vm3635_vm1, %v3636_v35 }
0x107f   :  { %3275 = vmatprep.subr.bf16.mxu0 %v3634_v27 }
0x1082   :  { %3277 = vmatpush3.bf16.msra.mxu0 %v3813_v37 }
0x1083   :  { %3278 = vmatprep.subr.bf16.mxu0 %v3634_v27 }
0x1140   :  { %v1792_v2 = vpop.f32.mrb[10].mxu0 }
0x1141   :  { %v1797_v3 = vrot.slane %v1792_v2, 2  ;;  %v1798_v4 = vrot.slane %v1792_v2, 3  ;;  %v3059_v5 = vpop.f32.mrb[11].mxu0 }
0x1143   :  { %v1801_v6 = vadd.f32 %v1797_v3, %v3760_v9  ;;  %v1802_v28 = vadd.f32 %v1798_v4, %v3758_v7 }
0x1145   :  { %3462 = vtanh.f32 %v1801_v6  ;;  %v2746_v14 = vmul.f32 -1.442695, %v1801_v6  ;;  %v2747_v15 = vmul.f32 -1.442695, %v1802_v28 }
0x1146   :  { %3464 = vtanh.f32 %v1802_v28 }
0x114f   :  { %v3463_v8 = vpop.eup %3462 }
0x1150   :  { %v3465_v10 = vpop.eup %3464  ;;  %v1944_v11 = vpop.f32.mrb[12].mxu0  ;;  %1965 = vrot.lane.b32.xlu0 %v3463_v8, %s3633_s30 }
0x1151   :  { %v3296_v36 = vadd.f32 %v3849_v0, %v1944_v11  ;;  %1967 = vrot.lane.b32.xlu1 %v3465_v10, %s3633_s30  ;;  %v3081_v12 = vpop.f32.mrb[13].mxu0  ;;  %v4157_v11 = vld [vmem:[%s4231_s6] ss:$0 sm:$0xff] }
0x1153   :  { %3466 = vtanh.f32 %v3296_v36  ;;  %v2748_v17 = vmul.f32 -1.442695, %v3296_v36 }
0x1154   :  { %3468 = vpow2.f32 %v2746_v14 }
0x1155   :  { %3470 = vpow2.f32 %v2747_v15 }
0x1156   :  { %3472 = vpow2.f32 %v2748_v17 }
0x115d   :  { %v3467_v13 = vpop.eup %3466 }
0x115e   :  { %2011 = vrot.lane.b32.xlu0 %v3467_v13, %s3633_s30  ;;  %v3469_v16 = vpop.eup %3468 }
0x115f   :  { %v3471_v19 = vpop.eup %3470  ;;  %v1955_v20 = vadd.f32 1.0, %v3469_v16 }
0x1160   :  { %v1956_v22 = vadd.f32 1.0, %v3471_v19  ;;  %v3473_v0 = vpop.eup %3472 }
0x1161   :  { %3474 = vrcp.f32 %v1955_v20  ;;  %v2006_v25 = vadd.f32 1.0, %v3473_v0 }
0x1162   :  { %3476 = vrcp.f32 %v1956_v22 }
0x1163   :  { %3478 = vrcp.f32 %v2006_v25 }
0x116b   :  { %v3475_v23 = vpop.eup %3474 }
0x116c   :  { %v3477_v29 = vpop.eup %3476  ;;  %v1979_v31 = vmul.f32 %v3475_v23, %v1975_v43 }
0x116d   :  { %v3479_v21 = vpop.eup %3478  ;;  %v1980_v50 = vmul.f32 %v3477_v29, %v1976_v45 }
0x116e   :  { %v2015_v56 = vmul.f32 %v3479_v21, %v4075_v46 }
0x11c2   :  { %v1966_v26 = vpop.permute.xlu0 %1965 }
0x11c3   :  { %v1968_v33 = vpop.permute.xlu1 %1967  ;;  %v1971_v24 = vmul.f32 %v3475_v23, %v1966_v26 }
0x11c4   :  { %v1972_v34 = vmul.f32 %v3477_v29, %v1968_v33 }
0x11c5   :  { %1983 = vrot.lane.b32.xlu1 %v1971_v24, %s3638_s4 }
0x11c6   :  { %1985 = vrot.lane.b32.xlu0 %v1972_v34, %s3638_s4 }
0x11d0   :  { %v2012_v41 = vpop.permute.xlu0 %2011 }
0x11d1   :  { %v2014_v42 = vmul.f32 %v3479_v21, %v2012_v41 }
0x11d3   :  { %2017 = vrot.lane.b32.xlu1 %v2014_v42, %s3638_s4 }
0x1237   :  { %v1984_v47 = vpop.permute.xlu1 %1983 }
0x1238   :  { %v4118_v53 = vadd.f32 %v1984_v47, %v1979_v31  ;;  %v1986_v39 = vpop.permute.xlu0 %1985 }
0x1239   :  { %v4120_v54 = vadd.f32 %v1986_v39, %v1980_v50 }
0x123a   :  { %3480 = vtanh.f32 %v4118_v53  ;;  %v2285_v41 = vrot.slane %v4118_v53, 7 }
0x123b   :  { %3482 = vtanh.f32 %v4120_v54  ;;  %v2286_v42 = vrot.slane %v4120_v54, 7 }
0x1244   :  { %v3481_v55 = vpop.eup %3480 }
0x1245   :  { %v3483_v49 = vpop.eup %3482  ;;  %v2018_v57 = vpop.permute.xlu1 %2017  ;;  %1995 = vrot.lane.b32.xlu0 %v3481_v55, %s3633_s30 }
0x1246   :  { %v4126_v52 = vadd.f32 %v2018_v57, %v2015_v56  ;;  %1997 = vrot.lane.b32.xlu1 %v3483_v49, %s3633_s30 }
0x1248   :  { %3484 = vtanh.f32 %v4126_v52 }
0x1252   :  { %v3485_v38 = vpop.eup %3484 }
0x1253   :  { %2023 = vrot.lane.b32.xlu0 %v3485_v38, %s3633_s30 }
0x12b7   :  { %v1996_v58 = vpop.permute.xlu0 %1995 }
0x12b8   :  { %v2001_v60 = vmul.f32 %v3475_v23, %v1996_v58  ;;  %v1998_v30 = vpop.permute.xlu1 %1997 }
0x12b9   :  { %v2002_v40 = vmul.f32 %v3477_v29, %v1998_v30 }
0x12ba   :  { %v2029_v51 = vrot.slane %v2001_v60, 6 }
0x12bb   :  { %v2030_v18 = vrot.slane %v2002_v40, 5 }
0x12bd   :  { %v2031_v46 = vsel %vm239_vm2, %v2030_v18, %v2029_v51 }
0x12be   :  { %2032 = vrot.lane.b32.xlu1 %v2031_v46, %s3638_s4 }
0x12c5   :  { %v2024_v61 = vpop.permute.xlu0 %2023 }
0x12c6   :  { %v4133_v59 = vmul.f32 %v3479_v21, %v2024_v61 }
0x12c8   :  { %2184 = vrot.lane.b32.xlu0 %v4133_v59, %s3638_s4 }
0x1330   :  { %v2033_v1 = vpop.permute.xlu1 %2032 }
0x1331   :  { %3091 = vmatmul.mubr.msk.f32.vlgmr.msra.gmra.mrb[12].mxu1 %vm243_vm3, %v2033_v1 }
0x1332   :  { %3262 = vmatpush3.bf16.msra.mxu1 %v3796_v32  ;;  %3101 = vmatprep.mubr.msk.f32.mxu1 %vm3635_vm1, %v3636_v35 }
0x1333   :  { %3263 = vmatprep.subr.bf16.mxu1 %v3634_v27 }
0x1336   :  { %3265 = vmatpush3.bf16.msra.mxu1 %v3813_v37 }
0x1337   :  { %3266 = vmatprep.subr.bf16.mxu1 %v3634_v27 }
0x1339   :  { %3102 = vmatmul.mubr.msk.f32.vlgmr.msra.gmra.mrb[14].mxu1 %vm243_vm3, %v2033_v1 }
0x133a   :  { %3268 = vmatpush3.bf16.msra.mxu1 %v3873_v44  ;;  %3112 = vmatprep.mubr.msk.f32.mxu1 %vm3635_vm1, %v3636_v35  ;;  %v2185_v32 = vpop.permute.xlu0 %2184 }
0x133b   :  { %3269 = vmatprep.subr.bf16.mxu1 %v3634_v27 }
0x133e   :  { %3271 = vmatpush3.bf16.msra.mxu1 %v3878_v48 }
0x1341   :  { %3113 = vmatmul.mubr.msk.f32.vlgmr.msra.gmra.mrb[14].mxu1 %vm243_vm3, %v2185_v32 }
0x1404   :  { %v2102_v2 = vpop.f32.mrb[12].mxu1 }
0x1405   :  { %v2107_v3 = vrot.slane %v2102_v2, 1  ;;  %v2108_v4 = vrot.slane %v2102_v2, 2  ;;  %v3092_v37 = vpop.f32.mrb[13].mxu1 }
0x1407   :  { %v2111_v5 = vadd.f32 %v2107_v3, %v3760_v9  ;;  %v2112_v6 = vadd.f32 %v2108_v4, %v3758_v7 }
0x1409   :  { %3486 = vtanh.f32 %v2111_v5  ;;  %v2752_v7 = vmul.f32 -1.442695, %v2111_v5  ;;  %v2753_v13 = vmul.f32 -1.442695, %v2112_v6 }
0x140a   :  { %3488 = vtanh.f32 %v2112_v6 }
0x1413   :  { %v3487_v28 = vpop.eup %3486 }
0x1414   :  { %v3489_v8 = vpop.eup %3488  ;;  %v2254_v10 = vpop.f32.mrb[14].mxu1  ;;  %2275 = vrot.lane.b32.xlu1 %v3487_v28, %s3633_s30 }
0x1415   :  { %v3297_v36 = vadd.f32 %v4157_v11, %v2254_v10  ;;  %2277 = vrot.lane.b32.xlu0 %v3489_v8, %s3633_s30  ;;  %v3114_v12 = vpop.f32.mrb[15].mxu1 }
0x1416   :  { %v2538_v12 = vld [vmem:[%s4232_s7] sm:$0xff] }
0x1417   :  { %3490 = vtanh.f32 %v3297_v36  ;;  %v2754_v15 = vmul.f32 -1.442695, %v3297_v36 }
0x1418   :  { %3492 = vpow2.f32 %v2752_v7  ;;  %v2540_v7 = vld [vmem:[%s4232_s7 + $0x10] sm:$0xff] }
0x1419   :  { %3494 = vpow2.f32 %v2753_v13  ;;  %v2541_v13 = vld [vmem:[%s4232_s7 + $0x18] sm:$0xff] }
0x141a   :  { %3496 = vpow2.f32 %v2754_v15 }
0x1421   :  { %v3491_v9 = vpop.eup %3490 }
0x1422   :  { %2321 = vrot.lane.b32.xlu1 %v3491_v9, %s3633_s30  ;;  %v3493_v14 = vpop.eup %3492  ;;  %v2539_v9 = vld [vmem:[%s4232_s7 + $0x8] sm:$0xff]  ;;  %s2762_s7 = sld [smem:[#allocation10 + $0x2]] }
0x1423   :  { %v3495_v16 = vpop.eup %3494  ;;  %v2265_v17 = vadd.f32 1.0, %v3493_v14  ;;  %v3288_v14 = vpack.c.bf16 %v2541_v13, %v2540_v7 }
0x1424   :  { %v2266_v19 = vadd.f32 1.0, %v3495_v16  ;;  %v3497_v20 = vpop.eup %3496 }
0x1425   :  { %3498 = vrcp.f32 %v2265_v17  ;;  %v2316_v0 = vadd.f32 1.0, %v3497_v20 }
0x1426   :  { %3500 = vrcp.f32 %v2266_v19 }
0x1427   :  { %3502 = vrcp.f32 %v2316_v0  ;;  %v2758_v0 = vld [vmem:[%s4233_s8] ss:$0 sm:$0xff] }
0x142f   :  { %v3499_v22 = vpop.eup %3498 }
0x1430   :  { %v3501_v25 = vpop.eup %3500  ;;  %v2289_v43 = vmul.f32 %v3499_v22, %v2285_v41  ;;  %v2654_v41 = vstv %s2763_s26 }
0x1431   :  { %v3503_v24 = vpop.eup %3502  ;;  %v2290_v31 = vmul.f32 %v3501_v25, %v2286_v42 }
0x1432   :  { %v2325_v56 = vmul.f32 %v3503_v24, %v4126_v52  ;;  %v2522_v52 = vrot.slane %v4133_v59, 6 }
0x1434   :  { %v2535_v32 = vsel %vm2529_vm4, %v4082_v63, %v2522_v52 }
0x1486   :  { %v2276_v23 = vpop.permute.xlu1 %2275 }
0x1487   :  { %v2278_v26 = vpop.permute.xlu0 %2277  ;;  %v2281_v29 = vmul.f32 %v3499_v22, %v2276_v23 }
0x1488   :  { %v2282_v33 = vmul.f32 %v3501_v25, %v2278_v26 }
0x1489   :  { %2293 = vrot.lane.b32.xlu0 %v2281_v29, %s3638_s4  ;;  %v2640_v29 = vstv %s2761_s24 }
0x148a   :  { %2295 = vrot.lane.b32.xlu1 %v2282_v33, %s3638_s4  ;;  %v2647_v33 = vstv %s2762_s7 }
0x1494   :  { %v2322_v34 = vpop.permute.xlu1 %2321 }
0x1495   :  { %v2324_v21 = vmul.f32 %v3503_v24, %v2322_v34 }
0x1497   :  { %2327 = vrot.lane.b32.xlu0 %v2324_v21, %s3638_s4  ;;  %v2637_v21 = vstv %s2636_s25 }
0x14fb   :  { %v2294_v45 = vpop.permute.xlu0 %2293 }
0x14fc   :  { %v2299_v47 = vadd.f32 %v2294_v45, %v2289_v43  ;;  %v2296_v50 = vpop.permute.xlu1 %2295 }
0x14fd   :  { %v2300_v39 = vadd.f32 %v2296_v50, %v2290_v31 }
0x14fe   :  { %3504 = vtanh.f32 %v2299_v47 }
0x14ff   :  { %3506 = vtanh.f32 %v2300_v39 }
0x1508   :  { %v3505_v55 = vpop.eup %3504 }
0x1509   :  { %v3507_v49 = vpop.eup %3506  ;;  %v2328_v57 = vpop.permute.xlu0 %2327  ;;  %2305 = vrot.lane.b32.xlu1 %v3505_v55, %s3633_s30 }
0x150a   :  { %v2330_v38 = vadd.f32 %v2328_v57, %v2325_v56  ;;  %2307 = vrot.lane.b32.xlu0 %v3507_v49, %s3633_s30  ;;  %v2661_v49 = vstv %s2764_s12  ;;  %v2672_v57 = vstv %s2766_s13 }
0x150c   :  { %3508 = vtanh.f32 %v2330_v38 }
0x1516   :  { %v3509_v53 = vpop.eup %3508 }
0x1517   :  { %2333 = vrot.lane.b32.xlu1 %v3509_v53, %s3633_s30 }
0x157b   :  { %v2306_v54 = vpop.permute.xlu1 %2305 }
0x157c   :  { %v2311_v58 = vmul.f32 %v3499_v22, %v2306_v54  ;;  %v2308_v60 = vpop.permute.xlu0 %2307 }
0x157d   :  { %v2312_v30 = vmul.f32 %v3501_v25, %v2308_v60 }
0x157e   :  { %v2339_v40 = vrot.slane %v2311_v58, 7  ;;  %v2679_v58 = vstv %s2767_s14 }
0x157f   :  { %v2340_v51 = vrot.slane %v2312_v30, 6 }
0x1581   :  { %v2341_v18 = vsel %vm239_vm2, %v2340_v51, %v2339_v40 }
0x1582   :  { %2342 = vrot.lane.b32.xlu0 %v2341_v18, %s3638_s4 }
0x1589   :  { %v2334_v46 = vpop.permute.xlu1 %2333 }
0x158a   :  { %v2336_v61 = vmul.f32 %v3503_v24, %v2334_v46 }
0x158c   :  { %v2524_v1 = vrot.slane %v2336_v61, 4  ;;  %2417 = vrot.lane.b32.xlu1 %v2336_v61, %s3638_s4 }
0x158e   :  { %v2536_v2 = vsel %vm2531_vm5, %v2535_v32, %v2524_v1 }
0x15f4   :  { %v2343_v3 = vpop.permute.xlu0 %2342 }
0x15f5   :  { %3124 = vmatmul.mubr.msk.f32.vlgmr.msra.gmra.mrb[14].mxu0 %vm243_vm3, %v2343_v3 }
0x15f6   :  { %3280 = vmatpush3.bf16.msra.mxu0 %v3873_v44  ;;  %3134 = vmatprep.mubr.msk.f32.mxu0 %vm3635_vm1, %v3636_v35 }
0x15f7   :  { %3281 = vmatprep.subr.bf16.mxu0 %v3634_v27 }
0x15fa   :  { %3283 = vmatpush3.bf16.msra.mxu0 %v3878_v48 }
0x15fe   :  { %v2418_v59 = vpop.permute.xlu1 %2417 }
0x15ff   :  { %3135 = vmatmul.mubr.msk.f32.vlgmr.msra.gmra.mrb[14].mxu0 %vm243_vm3, %v2418_v59 }
0x16d2   :  { %v2487_v4 = vpop.f32.mrb[14].mxu0 }
0x16d3   :  { %v3298_v63 = vadd.f32 %v4157_v11, %v2487_v4  ;;  %v3136_v37 = vpop.f32.mrb[15].mxu0 }
0x16d5   :  { %3510 = vtanh.f32 %v3298_v63  ;;  %v2757_v6 = vmul.f32 -1.442695, %v3298_v63 }
0x16d7   :  { %3512 = vpow2.f32 %v2757_v6 }
0x16df   :  { %v3511_v5 = vpop.eup %3510 }
0x16e0   :  { %2500 = vrot.lane.b32.xlu0 %v3511_v5, %s3633_s30 }
0x16e1   :  { %v3513_v44 = vpop.eup %3512 }
0x16e2   :  { %v2495_v28 = vadd.f32 1.0, %v3513_v44 }
0x16e4   :  { %3514 = vrcp.f32 %v2495_v28 }
0x16ee   :  { %v3515_v35 = vpop.eup %3514 }
0x16ef   :  { %v2504_v48 = vmul.f32 %v3515_v35, %v2330_v38 }
0x1752   :  { %v2501_v27 = vpop.permute.xlu0 %2500 }
0x1753   :  { %v2503_v8 = vmul.f32 %v3515_v35, %v2501_v27 }
0x1755   :  { %2506 = vrot.lane.b32.xlu1 %v2503_v8, %s3638_s4 }
0x1759   :  { %2551 = vrot.lane.b32.xlu1 %v4033_v62, %s3638_s4  ;;  %v3284_v62 = vpack.c.bf16 %v2539_v9, %v2538_v12 }
0x175b   :  { %3285 = vmatprep.subr.bf16.mxu1 %v3284_v62 }
0x175c   :  { %3287 = vmatpush3.bf16.msra.mxu1 %v3284_v62 }
0x175d   :  { %3289 = vmatprep.subr.bf16.mxu1 %v3288_v14 }
0x1760   :  { %3291 = vmatpush3.bf16.msra.mxu1 %v3288_v14 }
0x17c7   :  { %v2507_v10 = vpop.permute.xlu1 %2506 }
0x17c8   :  { %v2509_v11 = vadd.f32 %v2507_v10, %v2504_v48 }
0x17ca   :  { %3516 = vtanh.f32 %v2509_v11 }
0x17cb   :  { %v2552_v36 = vpop.permute.xlu1 %2551 }
0x17cc   :  { %3145 = vmatprep.mubr.msk.f32.mxu1 %vm243_vm3, %v2552_v36 }
0x17d4   :  { %v3517_v15 = vpop.eup %3516 }
0x17d5   :  { %2512 = vrot.lane.b32.xlu0 %v3517_v15, %s3633_s30  ;;  %s2765_s30 = sld [smem:[#allocation10 + $0x5]] }
0x17db   :  { %v2665_v39 = vstv %s2765_s30 }
0x1847   :  { %v2513_v16 = vpop.permute.xlu0 %2512 }
0x1848   :  { %v2515_v17 = vmul.f32 %v3515_v35, %v2513_v16 }
0x184a   :  { %v2527_v19 = vrot.slane %v2515_v17, 2 }
0x184c   :  { %v2537_v20 = vsel %vm2533_vm6, %v2536_v2, %v2527_v19  ;;  %v2686_v2 = vstv %s4235_s10 }
0x184d   :  { %2553 = vrot.lane.b32.xlu0 %v2537_v20, %s3638_s4 }
0x18bf   :  { %v2554_v22 = vpop.permute.xlu0 %2553 }
0x18c0   :  { %3146 = vmatmul.mubr.msk.f32.vlgmr.msra.gmra.mrb[16].mxu1 %vm243_vm3, %v2554_v22 }
0x1993   :  { %v3147_v23 = vpop.f32.mrb[16].mxu1 }
0x1994   :  { %v2625_v25 = vpop.f32.mrb[17].mxu1  ;;  %v2631_v24 = vadd.f32 %v3147_v23, %v2758_v0 }
0x1995   :  { %v2626_v26 = vadd.f32 %v2758_v0, %v2625_v25 }
0x1996   :  { %v2635_v45 = vmax.f32 %v2631_v24, 0.0 }
0x1997   :  { %v2634_v34 = vmax.f32 %v2626_v26, 0.0 }
0x1998   :  { %v2666_v38 = vmul.f32 %v2665_v39, %v2635_v45  ;;  %v2662_v60 = vmul.f32 %v2661_v49, %v2635_v45  ;;  %v2673_v30 = vmul.f32 %v2672_v57, %v2635_v45  ;;  %v2680_v52 = vmul.f32 %v2679_v58, %v2635_v45 }
0x1999   :  { %v2641_v42 = vmul.f32 %v2640_v29, %v2634_v34  ;;  %v2648_v43 = vmul.f32 %v2647_v33, %v2634_v34  ;;  %v2638_v31 = vmul.f32 %v2637_v21, %v2634_v34  ;;  %v2655_v50 = vmul.f32 %v2654_v41, %v2634_v34 }
0x199a   :  { %v2668_v51 = vrot.slane %v2666_v38, 2  ;;  %v2675_v61 = vrot.slane %v2673_v30, 4  ;;  %v2682_v32 = vrot.slane %v2680_v52, 6 }
0x199b   :  { %v2643_v47 = vrot.slane %v2641_v42, 2  ;;  %v2650_v56 = vrot.slane %v2648_v43, 4  ;;  %v2657_v54 = vrot.slane %v2655_v50, 6 }
0x199d   :  { %v2645_v55 = vadd.f32 %v2643_v47, %v2638_v31 }
0x199f   :  { %v2652_v53 = vadd.f32 %v2650_v56, %v2645_v55 }
0x19a1   :  { %v2659_v40 = vadd.f32 %v2657_v54, %v2652_v53 }
0x19a3   :  { %v2663_v18 = vadd.f32 %v2662_v60, %v2659_v40 }
0x19a5   :  { %v2670_v46 = vadd.f32 %v2668_v51, %v2663_v18 }
0x19a7   :  { %v2677_v1 = vadd.f32 %v2675_v61, %v2670_v46 }
0x19a9   :  { %v2684_v3 = vadd.f32 %v2682_v32, %v2677_v1 }
0x19ab   :  { %v2687_v59 = vadd.f32 %v2686_v2, %v2684_v3 }
0x19ad   :  { %v2688_v4 = vmax.f32 %v2687_v59, 0.0 }
0x19af   :  { %2690 = vst.msk [vmem:[#allocation11] sm:$0x3] %vm2689_vm7, %v2688_v4 }
0x19b0   :  { %3608 = shalt.err (!%p3605_p5)
}
0x19b1   :  { %s3609_s0 = scalar_lea.hbm %s4236_s11, 32 }
0x19b2   :  { %p3610_p6 = scmp.ne.s32.totalorder %s4236_s11, %s3609_s0  ;;  %p3613_p7 = scmp.lt.u32.totalorder %s3609_s0, %s4236_s11 }
0x19b4   :  { %p3615_p8 = pnand %p3613_p7, %p3610_p6 }
0x19b6   :  { %3618 = shalt.err (!%p3615_p8)
}
0x19b7   :  { %2700 = dma.vmem_to_hbm [thread:$0]  %s2698_s17, 32, %s4236_s11, [#allocation5]  }
0x19b8   :  { %3625 = dma.done.wait [#allocation5], 32  }
0x19b9   :  { %3626 = vsyncadd [#allocation5], 4294967264 }
0x19ba   :  { %2704 = vsyncpa [#allocation4], 1 }
0x19bb   :  { %2705 = vsyncpa [#allocation8], 1 }
0x19bc   :  { %2706 = vsyncpa [#allocation5], 1 }
0x19bd   :  { %2707 = vsyncpa [#allocation6], 1 }

</bundles_post_ra>
